<compile_context>
chip_gen: v5e
topology: v5e:2x2
jax: 0.10.0
libtpu: 0.0.40
codegen_flags: <defaults>
</compile_context>

<pallas_src>
import functools

import jax
import jax.numpy as jnp
from jax.experimental import pallas as pl
from jax.experimental.pallas import tpu as pltpu


def resblock_kernel(xf_ref, mask_ref, w1_ref, b1_ref, alpha_ref, w2_ref, b2_ref,
                    out_ref, hext_ref, *, K, Wp, Lout_pad, slack, res_scale,
                    mm_dtype):
    # xf_ref   : (1, Cpad, Lpad)   zero-extended, channel-padded, flattened input
    # mask_ref : (1, Lout_pad)     1.0 on valid (non frame-padding, < Lout) lanes
    # w1_ref   : (Cmid, K*K*Cpad)  conv1 weights, im2col column order (kh,kw,ci)
    # b1_ref   : (Cmid, 1)
    # alpha_ref: (1,) in SMEM      PReLU scalar
    # w2_ref   : (K*K, Cpad, Cmid) conv2 per-tap weights (out rows >= Cout are 0)
    # b2_ref   : (Cpad, 1)
    # out_ref  : (1, Cpad, Lout_pad)   lane-dense output slab
    # hext_ref : (Cmid, Lpad2) in mm_dtype: zero-padded conv1-output frame
    xf = xf_ref[0]                                     # (Cpad, Lpad) input dtype
    xf_mm = xf.astype(mm_dtype)                        # single cast at the source
    Cmid, Lpad2 = hext_ref.shape
    Cpad = out_ref.shape[1]

    # ---- conv1: one im2col matmul (contraction K*K*Cpad), bf16 in / f32 acc ----
    lhs1 = jnp.concatenate(
        [xf_mm[:, kh * Wp + kw: kh * Wp + kw + Lout_pad]
         for kh in range(K) for kw in range(K)], axis=0)            # (K*K*Cpad, Lout_pad)
    h = jnp.dot(w1_ref[...], lhs1,
                preferred_element_type=jnp.float32)                 # (Cmid, Lout_pad) f32
    h = h + b1_ref[...]

    # ---- PReLU with scalar alpha from SMEM ----
    alpha = alpha_ref[0]
    h = jnp.where(h > 0, h, alpha * h)

    # zero frame-padding columns (conv1 wrap-around garbage) and lanes >= Lout
    h = h * mask_ref[...]

    # ---- embed h into the zero-padded mm_dtype frame for conv2 ----
    # Border-only zeroing; the interior is fully overwritten each step.  Not
    # gated on program_id==0 on purpose (per-core scratch under "parallel").
    hext_ref[:, 0:slack] = jnp.zeros((Cmid, slack), mm_dtype)
    hext_ref[:, slack + Lout_pad:] = jnp.zeros(
        (Cmid, Lpad2 - slack - Lout_pad), mm_dtype)
    hext_ref[:, slack:slack + Lout_pad] = h.astype(mm_dtype)

    # ---- conv2: 9 accumulating per-tap matmuls straight from hext (no im2col) ----
    r = jnp.zeros((Cpad, Lout_pad), jnp.float32)
    for kh in range(K):
        for kw in range(K):
            off = kh * Wp + kw
            r = r + jnp.dot(w2_ref[kh * K + kw],
                            hext_ref[:, off:off + Lout_pad],
                            preferred_element_type=jnp.float32)     # (Cpad, Lout_pad)
    r = r + b2_ref[...]
    if res_scale != 1.0:                       # trace-time skip when == 1.0
        r = r * res_scale

    # ---- residual add from the lane-dense input slice; unmasked full store ----
    out_ref[0] = (r + xf[:, slack:slack + Lout_pad].astype(jnp.float32)
                  ).astype(out_ref.dtype)


def res_block_pallas(x_nchw, w1, b1, alpha, w2, b2, res_scale=1.0,
                     matmul_dtype=jnp.bfloat16):
    """ResBlock forward. x_nchw: (N, Cin, H, W). w1/w2 are HWIO."""
    N, Cin, H, W = x_nchw.shape
    K = w1.shape[0]
    p = K // 2
    Cmid = w1.shape[3]
    Cout = w2.shape[3]
    assert Cout == Cin, "ResBlock requires conv2 out_channels == n_feats"

    Hp, Wp = H + 2 * p, W + 2 * p
    L = Hp * Wp                                # flattened padded frame length
    Lout = H * Wp                              # columns that map back to output rows
    Lout_pad = pl.cdiv(Lout, 128) * 128        # lane-dense computed/stored width
    slack = p * Wp + p                         # ext column of the first valid pixel
    need = max(Lout_pad + 2 * slack, L + p)    # columns touched by the K*K tap windows
    Lpad = pl.cdiv(need, 128) * 128            # lane-aligned extended input length
    Lpad2 = pl.cdiv(Lout_pad + 2 * slack, 128) * 128   # hext scratch length
    Cpad = pl.cdiv(Cin, 8) * 8                 # pad channels to full sublane tiles
    dtype = x_nchw.dtype

    # ---- wrapper-side layout plumbing (XLA): NCHW -> (N, Cpad, Lpad) ----
    x_pad = jnp.pad(x_nchw, ((0, 0), (0, Cpad - Cin), (p, p), (p, p)))
    x_ext = jnp.pad(x_pad.reshape(N, Cpad, L),
                    ((0, 0), (0, 0), (p, Lpad - L - p)))

    # mask of valid columns within the computed slab
    col = jnp.arange(Lout_pad, dtype=jnp.int32)
    cmod = col % Wp
    mask = ((col < Lout) & (cmod >= p) & (cmod < p + W)
            ).astype(jnp.float32).reshape(1, Lout_pad)

    # conv1 weights in im2col layout: rows = out channel, cols = (kh, kw, c_in)
    w1p = jnp.pad(w1, ((0, 0), (0, 0), (0, Cpad - Cin), (0, 0)))
    w1mat = jnp.transpose(w1p, (3, 0, 1, 2)).reshape(Cmid, K * K * Cpad)
    w1mat = w1mat.astype(matmul_dtype)
    # conv2 weights per tap: (K*K, Cpad, Cmid); padded out-channel rows are zero
    w2taps = jnp.transpose(w2, (0, 1, 3, 2)).reshape(K * K, Cout, Cmid)
    w2taps = jnp.pad(w2taps, ((0, 0), (0, Cpad - Cout), (0, 0))).astype(matmul_dtype)
    b1col = jnp.reshape(b1, (Cmid, 1)).astype(jnp.float32)
    b2col = jnp.pad(jnp.reshape(b2, (Cout, 1)),
                    ((0, Cpad - Cout), (0, 0))).astype(jnp.float32)
    alpha_arr = jnp.reshape(alpha, (1,)).astype(jnp.float32)

    kernel = functools.partial(resblock_kernel, K=K, Wp=Wp, Lout_pad=Lout_pad,
                               slack=slack, res_scale=float(res_scale),
                               mm_dtype=matmul_dtype)

    out_ext = pl.pallas_call(
        kernel,
        out_shape=jax.ShapeDtypeStruct((N, Cpad, Lout_pad), dtype),
        grid_spec=pltpu.PrefetchScalarGridSpec(
            num_scalar_prefetch=0,
            grid=(N,),
            in_specs=[
                pl.BlockSpec((1, Cpad, Lpad), lambda n: (n, 0, 0)),      # x (padded, flat)
                pl.BlockSpec((1, Lout_pad), lambda n: (0, 0)),           # column mask
                pl.BlockSpec((Cmid, K * K * Cpad), lambda n: (0, 0)),    # W1 (resident)
                pl.BlockSpec((Cmid, 1), lambda n: (0, 0)),               # b1
                pl.BlockSpec(memory_space=pltpu.MemorySpace.SMEM),       # alpha (scalar)
                pl.BlockSpec((K * K, Cpad, Cmid), lambda n: (0, 0, 0)),  # W2 taps (resident)
                pl.BlockSpec((Cpad, 1), lambda n: (0, 0)),               # b2
            ],
            out_specs=pl.BlockSpec((1, Cpad, Lout_pad), lambda n: (n, 0, 0)),
            scratch_shapes=[pltpu.VMEM((Cmid, Lpad2), matmul_dtype)],
        ),
        compiler_params=pltpu.CompilerParams(
            dimension_semantics=("parallel",)),      # batch is independent -> 2 TCs on v7x
    )(x_ext, mask, w1mat, b1col, alpha_arr, w2taps, b2col)

    # (N, Cpad, Lout_pad) -> (N, Cin, H, W): drop lane padding, channel padding
    # and frame-pad columns
    return out_ext[:, :, :Lout].reshape(N, Cpad, H, Wp)[:, :Cin, :, p:p + W]


def res_block_reference(x, w1, b1, alpha, w2, b2, res_scale=1.0):
    """Plain-JAX reference matching the PyTorch forward (NCHW)."""
    dn = ('NCHW', 'HWIO', 'NCHW')
    h = jax.lax.conv_general_dilated(x, w1, (1, 1), 'SAME', dimension_numbers=dn)
    h = h + b1.reshape(1, -1, 1, 1)
    h = jnp.where(h > 0, h, alpha * h)
    r = jax.lax.conv_general_dilated(h, w2, (1, 1), 'SAME', dimension_numbers=dn)
    r = r + b2.reshape(1, -1, 1, 1)
    return r * res_scale + x


if __name__ == "__main__":
    # Small shapes consistent with the module: n_feats=4, hidden=64 (fixed by
    # the module), kernel_size=3, batch=2, spatial=16.
    N, n_feats, H, W = 2, 4, 16, 16
    C_mid = 64
    K = 3
    res_scale = 1.0

    key = jax.random.PRNGKey(0)
    kx, kw1, kb1, kw2, kb2 = jax.random.split(key, 5)

    x = jax.random.normal(kx, (N, n_feats, H, W), dtype=jnp.float32)
    w1 = 0.1 * jax.random.normal(kw1, (K, K, n_feats, C_mid), dtype=jnp.float32)
    b1 = 0.1 * jax.random.normal(kb1, (1, C_mid), dtype=jnp.float32)
    w2 = 0.1 * jax.random.normal(kw2, (K, K, C_mid, n_feats), dtype=jnp.float32)
    b2 = 0.1 * jax.random.normal(kb2, (1, n_feats), dtype=jnp.float32)
    alpha = jnp.float32(0.25)   # nn.PReLU() default init

    ref = res_block_reference(x, w1, b1, alpha, w2, b2, res_scale)

    # Fast path: bf16 MXU inputs (default), f32 accumulation/elementwise.
    out_bf16 = res_block_pallas(x, w1, b1, alpha, w2, b2, res_scale)
    out_bf16 = jax.block_until_ready(out_bf16)
    assert out_bf16.shape == (N, n_feats, H, W)
    assert jnp.allclose(out_bf16, ref, atol=1e-1, rtol=1e-1), \
        "Pallas bf16 output mismatch vs reference"

    # Strict correctness gate: full f32 path.
    out_f32 = res_block_pallas(x, w1, b1, alpha, w2, b2, res_scale,
                               matmul_dtype=jnp.float32)
    out_f32 = jax.block_until_ready(out_f32)
    assert out_f32.shape == (N, n_feats, H, W)
    assert jnp.allclose(out_f32, ref, atol=1e-4, rtol=1e-4), \
        "Pallas f32 output mismatch vs reference"

    print("KERNEL_OK")
</pallas_src>

<mosaic_0001>
module attributes {stable_mosaic.version = 11 : i64} {
  func.func @resblock_kernel(%arg0: i32, %arg1: memref<1x8x512xf32, #tpu.memory_space<vmem>>, %arg2: memref<1x384xf32, #tpu.memory_space<vmem>>, %arg3: memref<64x72xbf16, #tpu.memory_space<vmem>>, %arg4: memref<64x1xf32, #tpu.memory_space<vmem>>, %arg5: memref<1xf32, #tpu.memory_space<smem>>, %arg6: memref<9x8x64xbf16, #tpu.memory_space<vmem>>, %arg7: memref<8x1xf32, #tpu.memory_space<vmem>>, %arg8: memref<1x8x384xf32, #tpu.memory_space<vmem>>, %arg9: memref<64x512xbf16, #tpu.memory_space<vmem>>) attributes {dimension_semantics = [#tpu.dimension_semantics<parallel>], iteration_bounds = array<i64: 2>, scalar_prefetch = 0 : i64, scratch_operands = 1 : i64, tpu.core_type = #tpu.core_type<tc>, window_params = [{transform_indices = @transform_0, window_bounds = array<i64: 1, 8, 512>}, {pipeline_mode = #tpu.pipeline_mode<synchronous>, transform_indices = @transform_1, window_bounds = array<i64: 1, 384>}, {pipeline_mode = #tpu.pipeline_mode<synchronous>, transform_indices = @transform_2, window_bounds = array<i64: 64, 72>}, {pipeline_mode = #tpu.pipeline_mode<synchronous>, transform_indices = @transform_3, window_bounds = array<i64: 64, 1>}, {transform_indices = @transform_4, window_bounds = array<i64: 1>}, {pipeline_mode = #tpu.pipeline_mode<synchronous>, transform_indices = @transform_5, window_bounds = array<i64: 9, 8, 64>}, {pipeline_mode = #tpu.pipeline_mode<synchronous>, transform_indices = @transform_6, window_bounds = array<i64: 8, 1>}, {transform_indices = @transform_7, window_bounds = array<i64: 1, 8, 384>}]} {
    %c0 = arith.constant 0 : index
    %c0_0 = arith.constant 0 : index
    %c0_1 = arith.constant 0 : index
    %0 = vector.load %arg1[%c0, %c0_0, %c0_1] : memref<1x8x512xf32, #tpu.memory_space<vmem>>, vector<1x8x512xf32>
    %1 = vector.shape_cast %0 : vector<1x8x512xf32> to vector<8x512xf32>
    %2 = arith.truncf %1 : vector<8x512xf32> to vector<8x512xbf16>
    %3 = vector.extract_strided_slice %2 {offsets = [0, 0], sizes = [8, 384], strides = [1, 1]} : vector<8x512xbf16> to vector<8x384xbf16>
    %4 = vector.extract_strided_slice %2 {offsets = [0, 1], sizes = [8, 384], strides = [1, 1]} : vector<8x512xbf16> to vector<8x384xbf16>
    %5 = vector.extract_strided_slice %2 {offsets = [0, 2], sizes = [8, 384], strides = [1, 1]} : vector<8x512xbf16> to vector<8x384xbf16>
    %6 = vector.extract_strided_slice %2 {offsets = [0, 18], sizes = [8, 384], strides = [1, 1]} : vector<8x512xbf16> to vector<8x384xbf16>
    %7 = vector.extract_strided_slice %2 {offsets = [0, 19], sizes = [8, 384], strides = [1, 1]} : vector<8x512xbf16> to vector<8x384xbf16>
    %8 = vector.extract_strided_slice %2 {offsets = [0, 20], sizes = [8, 384], strides = [1, 1]} : vector<8x512xbf16> to vector<8x384xbf16>
    %9 = vector.extract_strided_slice %2 {offsets = [0, 36], sizes = [8, 384], strides = [1, 1]} : vector<8x512xbf16> to vector<8x384xbf16>
    %10 = vector.extract_strided_slice %2 {offsets = [0, 37], sizes = [8, 384], strides = [1, 1]} : vector<8x512xbf16> to vector<8x384xbf16>
    %11 = vector.extract_strided_slice %2 {offsets = [0, 38], sizes = [8, 384], strides = [1, 1]} : vector<8x512xbf16> to vector<8x384xbf16>
    %12 = tpu.concatenate %3, %4, %5, %6, %7, %8, %9, %10, %11 in 0 : vector<8x384xbf16>, vector<8x384xbf16>, vector<8x384xbf16>, vector<8x384xbf16>, vector<8x384xbf16>, vector<8x384xbf16>, vector<8x384xbf16>, vector<8x384xbf16>, vector<8x384xbf16> -> vector<72x384xbf16>
    %c0_2 = arith.constant 0 : index
    %c0_3 = arith.constant 0 : index
    %13 = vector.load %arg3[%c0_2, %c0_3] : memref<64x72xbf16, #tpu.memory_space<vmem>>, vector<64x72xbf16>
    %cst = arith.constant dense<0.000000e+00> : vector<64x384xf32>
    %14 = tpu.matmul %13, %12, %cst {dimension_numbers = #tpu.dot_dimension_numbers<[1], [0], [0], [1], [0, 0, 1, 1], [], []>} : vector<64x72xbf16>, vector<72x384xbf16>, vector<64x384xf32> -> vector<64x384xf32>
    %c0_4 = arith.constant 0 : index
    %c0_5 = arith.constant 0 : index
    %15 = vector.load %arg4[%c0_4, %c0_5] : memref<64x1xf32, #tpu.memory_space<vmem>>, vector<64x1xf32>
    %16 = vector.broadcast %15 : vector<64x1xf32> to vector<64x384xf32>
    %17 = arith.addf %14, %16 : vector<64x384xf32>
    %c0_6 = arith.constant 0 : index
    %18 = memref.load %arg5[%c0_6] : memref<1xf32, #tpu.memory_space<smem>>
    %cst_7 = arith.constant 0.000000e+00 : f32
    %19 = vector.broadcast %cst_7 : f32 to vector<64x384xf32>
    %20 = arith.cmpf ogt, %17, %19 : vector<64x384xf32>
    %21 = vector.broadcast %18 : f32 to vector<64x384xf32>
    %22 = arith.mulf %21, %17 : vector<64x384xf32>
    %23 = arith.select %20, %17, %22 : vector<64x384xi1>, vector<64x384xf32>
    %c0_8 = arith.constant 0 : index
    %c0_9 = arith.constant 0 : index
    %24 = vector.load %arg2[%c0_8, %c0_9] : memref<1x384xf32, #tpu.memory_space<vmem>>, vector<1x384xf32>
    %25 = vector.broadcast %24 : vector<1x384xf32> to vector<64x384xf32>
    %26 = arith.mulf %23, %25 : vector<64x384xf32>
    %cst_10 = arith.constant 0.000000e+00 : bf16
    %27 = vector.broadcast %cst_10 : bf16 to vector<64x19xbf16>
    %c0_11 = arith.constant 0 : index
    %c0_12 = arith.constant 0 : index
    %28 = vector.load %arg9[%c0_11, %c0_12] : memref<64x512xbf16, #tpu.memory_space<vmem>>, vector<64x19xbf16>
    tpu.vector_store %arg9[%c0_11, %c0_12], %27 {strides = array<i32>} : memref<64x512xbf16, #tpu.memory_space<vmem>>, vector<64x19xbf16>,
    %cst_13 = arith.constant 0.000000e+00 : bf16
    %29 = vector.broadcast %cst_13 : bf16 to vector<64x109xbf16>
    %c0_14 = arith.constant 0 : index
    %c403 = arith.constant 403 : index
    %30 = vector.load %arg9[%c0_14, %c403] : memref<64x512xbf16, #tpu.memory_space<vmem>>, vector<64x109xbf16>
    tpu.vector_store %arg9[%c0_14, %c403], %29 {strides = array<i32>} : memref<64x512xbf16, #tpu.memory_space<vmem>>, vector<64x109xbf16>,
    %31 = arith.truncf %26 : vector<64x384xf32> to vector<64x384xbf16>
    %c0_15 = arith.constant 0 : index
    %c19 = arith.constant 19 : index
    %32 = vector.load %arg9[%c0_15, %c19] : memref<64x512xbf16, #tpu.memory_space<vmem>>, vector<64x384xbf16>
    tpu.vector_store %arg9[%c0_15, %c19], %31 {strides = array<i32>} : memref<64x512xbf16, #tpu.memory_space<vmem>>, vector<64x384xbf16>,
    %cst_16 = arith.constant 0.000000e+00 : f32
    %33 = vector.broadcast %cst_16 : f32 to vector<8x384xf32>
    %c0_17 = arith.constant 0 : index
    %c0_18 = arith.constant 0 : index
    %c0_19 = arith.constant 0 : index
    %34 = vector.load %arg6[%c0_17, %c0_18, %c0_19] : memref<9x8x64xbf16, #tpu.memory_space<vmem>>, vector<1x8x64xbf16>
    %35 = vector.shape_cast %34 : vector<1x8x64xbf16> to vector<8x64xbf16>
    %c0_20 = arith.constant 0 : index
    %c0_21 = arith.constant 0 : index
    %36 = vector.load %arg9[%c0_20, %c0_21] : memref<64x512xbf16, #tpu.memory_space<vmem>>, vector<64x384xbf16>
    %cst_22 = arith.constant dense<0.000000e+00> : vector<8x384xf32>
    %37 = tpu.matmul %35, %36, %cst_22 {dimension_numbers = #tpu.dot_dimension_numbers<[1], [0], [0], [1], [0, 0, 1, 1], [], []>} : vector<8x64xbf16>, vector<64x384xbf16>, vector<8x384xf32> -> vector<8x384xf32>
    %38 = arith.addf %33, %37 : vector<8x384xf32>
    %c1 = arith.constant 1 : index
    %c0_23 = arith.constant 0 : index
    %c0_24 = arith.constant 0 : index
    %39 = vector.load %arg6[%c1, %c0_23, %c0_24] : memref<9x8x64xbf16, #tpu.memory_space<vmem>>, vector<1x8x64xbf16>
    %40 = vector.shape_cast %39 : vector<1x8x64xbf16> to vector<8x64xbf16>
    %c0_25 = arith.constant 0 : index
    %c1_26 = arith.constant 1 : index
    %41 = vector.load %arg9[%c0_25, %c1_26] : memref<64x512xbf16, #tpu.memory_space<vmem>>, vector<64x384xbf16>
    %cst_27 = arith.constant dense<0.000000e+00> : vector<8x384xf32>
    %42 = tpu.matmul %40, %41, %cst_27 {dimension_numbers = #tpu.dot_dimension_numbers<[1], [0], [0], [1], [0, 0, 1, 1], [], []>} : vector<8x64xbf16>, vector<64x384xbf16>, vector<8x384xf32> -> vector<8x384xf32>
    %43 = arith.addf %38, %42 : vector<8x384xf32>
    %c2 = arith.constant 2 : index
    %c0_28 = arith.constant 0 : index
    %c0_29 = arith.constant 0 : index
    %44 = vector.load %arg6[%c2, %c0_28, %c0_29] : memref<9x8x64xbf16, #tpu.memory_space<vmem>>, vector<1x8x64xbf16>
    %45 = vector.shape_cast %44 : vector<1x8x64xbf16> to vector<8x64xbf16>
    %c0_30 = arith.constant 0 : index
    %c2_31 = arith.constant 2 : index
    %46 = vector.load %arg9[%c0_30, %c2_31] : memref<64x512xbf16, #tpu.memory_space<vmem>>, vector<64x384xbf16>
    %cst_32 = arith.constant dense<0.000000e+00> : vector<8x384xf32>
    %47 = tpu.matmul %45, %46, %cst_32 {dimension_numbers = #tpu.dot_dimension_numbers<[1], [0], [0], [1], [0, 0, 1, 1], [], []>} : vector<8x64xbf16>, vector<64x384xbf16>, vector<8x384xf32> -> vector<8x384xf32>
    %48 = arith.addf %43, %47 : vector<8x384xf32>
    %c3 = arith.constant 3 : index
    %c0_33 = arith.constant 0 : index
    %c0_34 = arith.constant 0 : index
    %49 = vector.load %arg6[%c3, %c0_33, %c0_34] : memref<9x8x64xbf16, #tpu.memory_space<vmem>>, vector<1x8x64xbf16>
    %50 = vector.shape_cast %49 : vector<1x8x64xbf16> to vector<8x64xbf16>
    %c0_35 = arith.constant 0 : index
    %c18 = arith.constant 18 : index
    %51 = vector.load %arg9[%c0_35, %c18] : memref<64x512xbf16, #tpu.memory_space<vmem>>, vector<64x384xbf16>
    %cst_36 = arith.constant dense<0.000000e+00> : vector<8x384xf32>
    %52 = tpu.matmul %50, %51, %cst_36 {dimension_numbers = #tpu.dot_dimension_numbers<[1], [0], [0], [1], [0, 0, 1, 1], [], []>} : vector<8x64xbf16>, vector<64x384xbf16>, vector<8x384xf32> -> vector<8x384xf32>
    %53 = arith.addf %48, %52 : vector<8x384xf32>
    %c4 = arith.constant 4 : index
    %c0_37 = arith.constant 0 : index
    %c0_38 = arith.constant 0 : index
    %54 = vector.load %arg6[%c4, %c0_37, %c0_38] : memref<9x8x64xbf16, #tpu.memory_space<vmem>>, vector<1x8x64xbf16>
    %55 = vector.shape_cast %54 : vector<1x8x64xbf16> to vector<8x64xbf16>
    %c0_39 = arith.constant 0 : index
    %c19_40 = arith.constant 19 : index
    %56 = vector.load %arg9[%c0_39, %c19_40] : memref<64x512xbf16, #tpu.memory_space<vmem>>, vector<64x384xbf16>
    %cst_41 = arith.constant dense<0.000000e+00> : vector<8x384xf32>
    %57 = tpu.matmul %55, %56, %cst_41 {dimension_numbers = #tpu.dot_dimension_numbers<[1], [0], [0], [1], [0, 0, 1, 1], [], []>} : vector<8x64xbf16>, vector<64x384xbf16>, vector<8x384xf32> -> vector<8x384xf32>
    %58 = arith.addf %53, %57 : vector<8x384xf32>
    %c5 = arith.constant 5 : index
    %c0_42 = arith.constant 0 : index
    %c0_43 = arith.constant 0 : index
    %59 = vector.load %arg6[%c5, %c0_42, %c0_43] : memref<9x8x64xbf16, #tpu.memory_space<vmem>>, vector<1x8x64xbf16>
    %60 = vector.shape_cast %59 : vector<1x8x64xbf16> to vector<8x64xbf16>
    %c0_44 = arith.constant 0 : index
    %c20 = arith.constant 20 : index
    %61 = vector.load %arg9[%c0_44, %c20] : memref<64x512xbf16, #tpu.memory_space<vmem>>, vector<64x384xbf16>
    %cst_45 = arith.constant dense<0.000000e+00> : vector<8x384xf32>
    %62 = tpu.matmul %60, %61, %cst_45 {dimension_numbers = #tpu.dot_dimension_numbers<[1], [0], [0], [1], [0, 0, 1, 1], [], []>} : vector<8x64xbf16>, vector<64x384xbf16>, vector<8x384xf32> -> vector<8x384xf32>
    %63 = arith.addf %58, %62 : vector<8x384xf32>
    %c6 = arith.constant 6 : index
    %c0_46 = arith.constant 0 : index
    %c0_47 = arith.constant 0 : index
    %64 = vector.load %arg6[%c6, %c0_46, %c0_47] : memref<9x8x64xbf16, #tpu.memory_space<vmem>>, vector<1x8x64xbf16>
    %65 = vector.shape_cast %64 : vector<1x8x64xbf16> to vector<8x64xbf16>
    %c0_48 = arith.constant 0 : index
    %c36 = arith.constant 36 : index
    %66 = vector.load %arg9[%c0_48, %c36] : memref<64x512xbf16, #tpu.memory_space<vmem>>, vector<64x384xbf16>
    %cst_49 = arith.constant dense<0.000000e+00> : vector<8x384xf32>
    %67 = tpu.matmul %65, %66, %cst_49 {dimension_numbers = #tpu.dot_dimension_numbers<[1], [0], [0], [1], [0, 0, 1, 1], [], []>} : vector<8x64xbf16>, vector<64x384xbf16>, vector<8x384xf32> -> vector<8x384xf32>
    %68 = arith.addf %63, %67 : vector<8x384xf32>
    %c7 = arith.constant 7 : index
    %c0_50 = arith.constant 0 : index
    %c0_51 = arith.constant 0 : index
    %69 = vector.load %arg6[%c7, %c0_50, %c0_51] : memref<9x8x64xbf16, #tpu.memory_space<vmem>>, vector<1x8x64xbf16>
    %70 = vector.shape_cast %69 : vector<1x8x64xbf16> to vector<8x64xbf16>
    %c0_52 = arith.constant 0 : index
    %c37 = arith.constant 37 : index
    %71 = vector.load %arg9[%c0_52, %c37] : memref<64x512xbf16, #tpu.memory_space<vmem>>, vector<64x384xbf16>
    %cst_53 = arith.constant dense<0.000000e+00> : vector<8x384xf32>
    %72 = tpu.matmul %70, %71, %cst_53 {dimension_numbers = #tpu.dot_dimension_numbers<[1], [0], [0], [1], [0, 0, 1, 1], [], []>} : vector<8x64xbf16>, vector<64x384xbf16>, vector<8x384xf32> -> vector<8x384xf32>
    %73 = arith.addf %68, %72 : vector<8x384xf32>
    %c8 = arith.constant 8 : index
    %c0_54 = arith.constant 0 : index
    %c0_55 = arith.constant 0 : index
    %74 = vector.load %arg6[%c8, %c0_54, %c0_55] : memref<9x8x64xbf16, #tpu.memory_space<vmem>>, vector<1x8x64xbf16>
    %75 = vector.shape_cast %74 : vector<1x8x64xbf16> to vector<8x64xbf16>
    %c0_56 = arith.constant 0 : index
    %c38 = arith.constant 38 : index
    %76 = vector.load %arg9[%c0_56, %c38] : memref<64x512xbf16, #tpu.memory_space<vmem>>, vector<64x384xbf16>
    %cst_57 = arith.constant dense<0.000000e+00> : vector<8x384xf32>
    %77 = tpu.matmul %75, %76, %cst_57 {dimension_numbers = #tpu.dot_dimension_numbers<[1], [0], [0], [1], [0, 0, 1, 1], [], []>} : vector<8x64xbf16>, vector<64x384xbf16>, vector<8x384xf32> -> vector<8x384xf32>
    %78 = arith.addf %73, %77 : vector<8x384xf32>
    %c0_58 = arith.constant 0 : index
    %c0_59 = arith.constant 0 : index
    %79 = vector.load %arg7[%c0_58, %c0_59] : memref<8x1xf32, #tpu.memory_space<vmem>>, vector<8x1xf32>
    %80 = vector.broadcast %79 : vector<8x1xf32> to vector<8x384xf32>
    %81 = arith.addf %78, %80 : vector<8x384xf32>
    %82 = vector.extract_strided_slice %1 {offsets = [0, 19], sizes = [8, 384], strides = [1, 1]} : vector<8x512xf32> to vector<8x384xf32>
    %83 = arith.addf %81, %82 : vector<8x384xf32>
    %c0_60 = arith.constant 0 : index
    %c0_61 = arith.constant 0 : index
    %c0_62 = arith.constant 0 : index
    %84 = vector.load %arg8[%c0_60, %c0_61, %c0_62] : memref<1x8x384xf32, #tpu.memory_space<vmem>>, vector<1x8x384xf32>
    %85 = vector.shape_cast %84 : vector<1x8x384xf32> to vector<8x384xf32>
    %86 = vector.shape_cast %83 : vector<8x384xf32> to vector<1x8x384xf32>
    tpu.vector_store %arg8[%c0_60, %c0_61, %c0_62], %86 {strides = array<i32>} : memref<1x8x384xf32, #tpu.memory_space<vmem>>, vector<1x8x384xf32>,
    return
  }
  func.func @transform_0(%arg0: i32) -> (i32, i32, i32) {
    %c0_i32 = arith.constant 0 : i32
    %c0_i32_0 = arith.constant 0 : i32
    %c0_i32_1 = arith.constant 0 : i32
    return %arg0, %c0_i32, %c0_i32_0 : i32, i32, i32
  }
  func.func @transform_1(%arg0: i32) -> (i32, i32) {
    %c0_i32 = arith.constant 0 : i32
    %c0_i32_0 = arith.constant 0 : i32
    %c0_i32_1 = arith.constant 0 : i32
    return %c0_i32, %c0_i32_0 : i32, i32
  }
  func.func @transform_2(%arg0: i32) -> (i32, i32) {
    %c0_i32 = arith.constant 0 : i32
    %c0_i32_0 = arith.constant 0 : i32
    %c0_i32_1 = arith.constant 0 : i32
    return %c0_i32, %c0_i32_0 : i32, i32
  }
  func.func @transform_3(%arg0: i32) -> (i32, i32) {
    %c0_i32 = arith.constant 0 : i32
    %c0_i32_0 = arith.constant 0 : i32
    %c0_i32_1 = arith.constant 0 : i32
    return %c0_i32, %c0_i32_0 : i32, i32
  }
  func.func @transform_4(%arg0: i32) -> i32 {
    %c0_i32 = arith.constant 0 : i32
    %c0_i32_0 = arith.constant 0 : i32
    return %c0_i32 : i32
  }
  func.func @transform_5(%arg0: i32) -> (i32, i32, i32) {
    %c0_i32 = arith.constant 0 : i32
    %c0_i32_0 = arith.constant 0 : i32
    %c0_i32_1 = arith.constant 0 : i32
    %c0_i32_2 = arith.constant 0 : i32
    return %c0_i32, %c0_i32_0, %c0_i32_1 : i32, i32, i32
  }
  func.func @transform_6(%arg0: i32) -> (i32, i32) {
    %c0_i32 = arith.constant 0 : i32
    %c0_i32_0 = arith.constant 0 : i32
    %c0_i32_1 = arith.constant 0 : i32
    return %c0_i32, %c0_i32_0 : i32, i32
  }
  func.func @transform_7(%arg0: i32) -> (i32, i32, i32) {
    %c0_i32 = arith.constant 0 : i32
    %c0_i32_0 = arith.constant 0 : i32
    %c0_i32_1 = arith.constant 0 : i32
    return %arg0, %c0_i32, %c0_i32_0 : i32, i32, i32
  }
}

</mosaic_0001>

<bundles_post_ra>
// kernel: tpu_custom_call.1
= control target key start
LH: loop header
LB: loop body
LE: loop exit
PB: predicated region body
PF: predicated region fallthrough
CT: control target
= control target key end

     0   :  { %s3786_s0 = inlined_call_operand.vmem [shape: f32[2,8,512], index: 0, kind: input, shape index: {}]   ;;  %s3787_s1 = inlined_call_operand.vmem [shape: f32[1,384], index: 1, kind: input, shape index: {}]   ;;  %s3788_s2 = inlined_call_operand.hbm [shape: bf16[64,72], index: 2, kind: input, shape index: {}]   ;;  %s3789_s3 = inlined_call_operand.vmem [shape: f32[64,1], index: 3, kind: input, shape index: {}]   ;;  %s3790_s4 = inlined_call_operand.<no memory space> [shape: f32[1], index: 4, kind: input, shape index: {}]   ;;  %s3791_s5 = inlined_call_operand.hbm [shape: bf16[9,8,64], index: 5, kind: input, shape index: {}]   ;;  %s3792_s6 = inlined_call_operand.vmem [shape: f32[8,1], index: 6, kind: input, shape index: {}]   ;;  %s3793_s7 = inlined_call_operand.hbm [shape: f32[2,8,384], index: 7, kind: output, shape index: {}]  }
   0x1   :  { %12 = sst [smem:[#allocation3]] %s3790_s4 }
   0x2   :  { %13 = vsyncpa [#allocation5], 0 }
   0x3   :  { %14 = vsyncpa [#allocation8], 0 }
   0x4   :  { %15 = vsyncpa [#allocation6], 0 }
   0x5   :  { %17 = vsyncpa [#allocation6 + $0x1], 0  ;;  %s2565_s26 = smov 0   ;;  %s2567_s27 = smov 0  }
   0x6   :  { %s2569_s28 = smov 0   ;;  %s2571_s29 = smov 0  }
   0x7 LB: > { %s2586_s4 = sadd.s32 4294967295, %s2506_s29   ;;  %s2082_s30 = sadd.s32 4294967294, %s2506_s29   ;;  %s2506_s29 = sphi %s2571_s29, %s3831_s29   ;;  %s2502_s28 = sphi %s2569_s28, %s3830_s28   ;;  %s2498_s27 = sphi %s2567_s27, %s3829_s27   ;;  %s2494_s26 = sphi %s2565_s26, %s3828_s26  }
   0x8   : > { %s2590_s8 = sadd.s32 1, %s2506_s29   ;;  %s182_s9 = sadd.s32 1, %s2502_s28 }
   0x9   : > { %s179_s10 = ssub.s32 %s2506_s29, %s2590_s8  ;;  %p192_p0 = scmp.ne.s32.totalorder %s2502_s28, %s2498_s27 }
   0xa   : > { %p180_p1 = scmp.eq.s32.totalorder %s179_s10, 0  ;;  %p193_p2 = scmp.eq.s32.totalorder %s2586_s4, 1 }
   0xb   : > { %p198_p3 = scmp.ne.s32.totalorder %s2498_s27, %s2494_s26  ;;  %p199_p4 = scmp.eq.s32.totalorder %s2082_s30, 1 }
   0xc   : > { %s2601_s11 = scalar_select %p180_p1, %s2502_s28, %s182_s9  }
   0xd   : > { %p2603_p5 = por %p193_p2, %p192_p0  ;;  %p2607_p6 = por %p199_p4, %p198_p3 }
   0xe   : > { %p2083_p7 = scmp.ge.s32.totalorder %s2506_s29, 1  ;;  %p206_p8 = scmp.lt.s32.totalorder %s2506_s29, 3 }
   0xf   : > { %p2318_p9 = scmp.eq.s32.totalorder %s2586_s4, 0  ;;  %s220_s17 = sshll.u32 %s3788_s2, 4  ;;  %s221_s17 = int_to_ptr.hbm [resolvable:$true] %s220_s17 }
  0x10   : > { %p2614_p10 = pnand %p2083_p7, %p206_p8  ;;  %s2508_s18 = smov [#allocation4]  }
  0x11   : > { %s222_s19 = sshll.u32 %s2508_s18, 4  ;;  %s240_s22 = sshll.u32 %s3791_s5, 4  ;;  %s223_s19 = int_to_ptr.vmem [resolvable:$true] %s222_s19  ;;  %s241_s22 = int_to_ptr.hbm [resolvable:$true] %s240_s22 }
  0x12   : > { %p2307_p11 = pneg %p2614_p10  ;;  %s2509_s23 = smov 64  }
  0x13   : > { %s2510_s24 = smov 4   ;;  %s2511_s25 = smov [#allocation7]  }
  0x14   : > { %p2308_p12 = pnand %p2318_p9, %p2307_p11  ;;  %s242_s30 = sshll.u32 %s2511_s25, 4  ;;  %s243_s30 = int_to_ptr.vmem [resolvable:$true] %s242_s30 }
  0x15   : > { %269 = sbr.rel (%p2614_p10) target bundleno = 1090 (0x442), region = 48 }
  0x16   : > { %2310 = dma.hbm_to_vmem [thread:$0]  (!%p2308_p12), %s221_s17, 512, %s223_s19, [#allocation5], %s2509_s23, %s2509_s23, %s2510_s24  }
  0x17   : > { %2313 = dma.hbm_to_vmem [thread:$0]  (!%p2308_p12), %s241_s22, 576, %s243_s30, [#allocation8], %s2509_s23, %s2509_s23, %s2510_s24  }
  0x1a   : > { %2481 = dma.done.wait (%p2318_p9), [#allocation5], 512  }
  0x1b   : > { %2483 = vsyncadd (%p2318_p9), [#allocation5], 4294966784 }
  0x1c   : > { %2485 = dma.done.wait (%p2318_p9), [#allocation8], 576  }
  0x1d   : > { %2487 = vsyncadd (%p2318_p9), [#allocation8], 4294966720  ;;  %p307_p13 = scmp.lt.s32.totalorder %s2586_s4, 1  ;;  %s3794_s17 = smov 90   ;;  %vm421_vm0 = vcmask 736256   ;;  %vm425_vm1 = vcmask 1043456  }
  0x1e   : > { %s2513_s18 = smov 92   ;;  %s3796_s19 = smov 91   ;;  %vm397_vm2 = vcmask 752640   ;;  %vm409_vm3 = vcmask 744448   ;;  %vm373_vm4 = vcmask 891904   ;;  %vm385_vm5 = vcmask 883712  }
  0x1f   : > { %s308_s9 = scalar_select %p307_p13, %s2586_s4, 1  ;;  %v2520_v51 = vmov 0   ;;  %vm349_vm6 = vcmask 1031168   ;;  %vm361_vm7 = vcmask 900096   ;;  %v483_v56 = vld [vmem:[%s3789_s3 + $0x8] sm:$0xff]  ;;  %v488_v60 = vld [vmem:[%s3789_s3 + $0x30] sm:$0xff] }
  0x20   : > { %s2515_s20 = smov 109   ;;  %s2516_s21 = smov 108   ;;  %2370 = vset.pattern.permute.xlu0 %v2520_v51  ;;  %2369 = vset.pattern.permute.xlu2 %v2520_v51  ;;  %vm337_vm8 = vcmask 1039360   ;;  %vm550_vm9 = vcmask 588800  }
  0x21   : > { %s2262_s10 = sshll.u32 %s308_s9, 5  ;;  %s2517_s22 = smov 126   ;;  %2371 = vset.pattern.permute.xlu1 %v2520_v51 }
  0x22   : > { %s2643_s16 = scalar_lea.vmem %s3786_s0, %s2262_s10  ;;  %s2518_s23 = smov 110  }
  0x23   : > { %v315_v0 = vld [vmem:[%s2643_s16 + $0x10] sm:$0xff]  ;;  %v316_v1 = vld [vmem:[%s2643_s16 + $0x18] sm:$0xff]  ;;  %v313_v2 = vld [vmem:[%s2643_s16] sm:$0xff]  ;;  %s2519_s24 = smov 127   ;;  %s2521_s10 = smov 19  }
  0x24   : > { %v318_v3 = vpack.c.bf16 %v316_v1, %v315_v0  ;;  %v314_v4 = vld [vmem:[%s2643_s16 + $0x8] sm:$0xff]  ;;  %s3817_s15 = smov 90  }
  0x25   : > { %v317_v5 = vpack.c.bf16 %v314_v4, %v313_v2 }
  0x26   : > { %v323_v6 = vunpack.c.l.b16 %v318_v3  ;;  %v327_v12 = vunpack.c.h.b16 %v318_v3 }
  0x27   : > { %v322_v7 = vunpack.c.h.b16 %v317_v5  ;;  %v321_v8 = vunpack.c.l.b16 %v317_v5 }
  0x28   : > { %v2649_v9 = vpack.c.b16 %v323_v6, %v323_v6  ;;  %v328_v13 = vpack.c.b16 %v327_v12, %v327_v12 }
  0x29   : > { %v2651_v10 = vpack.c.b16 %v322_v7, %v322_v7  ;;  %v2653_v11 = vpack.c.b16 %v321_v8, %v321_v8 }
  0x2a   : > { %417 = vrot.lane.b32.xlu1 %v2649_v9, %s3794_s17 }
  0x2b   : > { %391 = vrot.lane.b32.xlu2 %v2651_v10, %s2513_s18  ;;  %413 = vrot.lane.b32.xlu0 %v2653_v11, %s3794_s17 }
  0x32   : > { %389 = vrot.lane.b32.xlu1 %v2653_v11, %s2513_s18 }
  0x33   : > { %393 = vrot.lane.b32.xlu2 %v2649_v9, %s2513_s18  ;;  %415 = vrot.lane.b32.xlu0 %v2651_v10, %s3794_s17 }
  0x3a   : > { %403 = vrot.lane.b32.xlu1 %v2651_v10, %s3796_s19 }
  0x3b   : > { %405 = vrot.lane.b32.xlu2 %v2649_v9, %s3796_s19  ;;  %401 = vrot.lane.b32.xlu0 %v2653_v11, %s3796_s19 }
  0x42   : > { %367 = vrot.lane.b32.xlu1 %v2651_v10, %s2515_s20 }
  0x43   : > { %369 = vrot.lane.b32.xlu2 %v2649_v9, %s2515_s20  ;;  %365 = vrot.lane.b32.xlu0 %v2653_v11, %s2515_s20 }
  0x4a   : > { %379 = vrot.lane.b32.xlu1 %v2651_v10, %s2516_s21 }
  0x4b   : > { %381 = vrot.lane.b32.xlu2 %v2649_v9, %s2516_s21  ;;  %377 = vrot.lane.b32.xlu0 %v2653_v11, %s2516_s21 }
  0x52   : > { %341 = vrot.lane.b32.xlu1 %v2653_v11, %s2517_s22 }
  0x53   : > { %343 = vrot.lane.b32.xlu2 %v2651_v10, %s2517_s22  ;;  %419 = vrot.lane.b32.xlu0 %v328_v13, %s3794_s17  ;;  %s659_s17 = sld [smem:[#allocation3]] }
  0x5a   : > { %353 = vrot.lane.b32.xlu1 %v2653_v11, %s2518_s23 }
  0x5b   : > { %355 = vrot.lane.b32.xlu2 %v2651_v10, %s2518_s23  ;;  %345 = vrot.lane.b32.xlu0 %v2649_v9, %s2517_s22 }
  0x62   : > { %395 = vrot.lane.b32.xlu1 %v328_v13, %s2513_s18 }
  0x63   : > { %407 = vrot.lane.b32.xlu2 %v328_v13, %s3796_s19  ;;  %357 = vrot.lane.b32.xlu0 %v2649_v9, %s2518_s23 }
  0x6a   : > { %331 = vrot.lane.b32.xlu1 %v2651_v10, %s2519_s24 }
  0x6b   : > { %333 = vrot.lane.b32.xlu2 %v2649_v9, %s2519_s24  ;;  %329 = vrot.lane.b32.xlu0 %v2653_v11, %s2519_s24 }
  0x72   : > { %383 = vrot.lane.b32.xlu1 %v328_v13, %s2516_s21 }
  0x73   : > { %347 = vrot.lane.b32.xlu2 %v328_v13, %s2517_s22  ;;  %371 = vrot.lane.b32.xlu0 %v328_v13, %s2515_s20 }
  0x7a   : > { %335 = vrot.lane.b32.xlu1 %v328_v13, %s2519_s24 }
  0x7b   : > { %359 = vrot.lane.b32.xlu0 %v328_v13, %s2518_s23  ;;  %v2263_v13 = vld [vmem:[#allocation4] sm:$0xff] }
  0x83   : > { %497 = vperm.xlu0 %2370, %v483_v56  }
  0x85   : > { %v392_v14 = vpop.permute.xlu2 %391 }
  0x8b   : > { %522 = vperm.xlu0 %2370, %v488_v60  }
  0x8d   : > { %v2711_v15 = vpop.permute.xlu2 %393 }
  0x8e   : > { %v399_v28 = vsel %vm397_vm2, %v392_v14, %v2711_v15 }
  0x95   : > { %v2713_v18 = vpop.permute.xlu2 %405 }
  0x9c   : > { %v418_v16 = vpop.permute.xlu1 %417 }
  0x9d   : > { %v414_v17 = vpop.permute.xlu0 %413  ;;  %v2719_v25 = vpop.permute.xlu2 %369 }
  0xa4   : > { %v390_v19 = vpop.permute.xlu1 %389 }
  0xa5   : > { %v416_v20 = vpop.permute.xlu0 %415  ;;  %v398_v30 = vsel %vm397_vm2, %v390_v19, %v392_v14  ;;  %v2729_v34 = vpop.permute.xlu2 %381  ;;  %v484_v19 = vld [vmem:[%s3789_s3 + $0x10] sm:$0xff] }
  0xa6   : > { %v422_v21 = vsel %vm421_vm0, %v414_v17, %v416_v20  ;;  %v423_v22 = vsel %vm421_vm0, %v416_v20, %v418_v16  ;;  %502 = vperm.xlu1 %2371, %v484_v19  }
  0xa7   : > { %v564_v23 = vsel %vm425_vm1, %v422_v21, 0  ;;  %v567_v24 = vsel %vm425_vm1, %v423_v22, 0 }
  0xa8   : > { %575 = vmatpush.bf16.msra.mxu0 %v564_v23  ;;  %604 = vmatpush.bf16.msra.mxu1 %v567_v24 }
  0xac   : > { %v404_v26 = vpop.permute.xlu1 %403 }
  0xad   : > { %v402_v27 = vpop.permute.xlu0 %401  ;;  %v411_v29 = vsel %vm409_vm3, %v404_v26, %v2713_v18  ;;  %v344_v41 = vpop.permute.xlu2 %343 }
  0xae   : > { %v410_v31 = vsel %vm409_vm3, %v402_v27, %v404_v26  ;;  %v468_v32 = vsel %vm425_vm1, %v399_v28, %v411_v29  ;;  %v2264_v26 = vld [vmem:[#allocation4 + $0x8] sm:$0xff]  ;;  %v485_v29 = vld [vmem:[%s3789_s3 + $0x18] sm:$0xff] }
  0xaf   : > { %v464_v33 = vsel %vm425_vm1, %v398_v30, %v410_v31  ;;  %605 = vmatpush.bf16.msra.mxu1 %v468_v32  ;;  %v486_v30 = vld [vmem:[%s3789_s3 + $0x20] sm:$0xff]  ;;  %v487_v31 = vld [vmem:[%s3789_s3 + $0x28] sm:$0xff]  ;;  %v2265_v32 = vld [vmem:[#allocation4 + $0x10] sm:$0xff] }
  0xb0   : > { %576 = vmatpush.bf16.msra.mxu0 %v464_v33  ;;  %512 = vperm.xlu1 %2371, %v486_v30   ;;  %v2266_v33 = vld [vmem:[#allocation4 + $0x18] sm:$0xff] }
  0xb4   : > { %v368_v35 = vpop.permute.xlu1 %367 }
  0xb5   : > { %v366_v36 = vpop.permute.xlu0 %365  ;;  %v375_v39 = vsel %vm373_vm4, %v368_v35, %v2719_v25  ;;  %v356_v50 = vpop.permute.xlu2 %355 }
  0xb6   : > { %v374_v42 = vsel %vm373_vm4, %v366_v36, %v368_v35  ;;  %v733_v35 = vld [vmem:[%s3787_s1] sm:$0x7]  ;;  %v2811_v36 = vstv %s659_s17 }
  0xbc   : > { %v380_v37 = vpop.permute.xlu1 %379 }
  0xbd   : > { %v378_v38 = vpop.permute.xlu0 %377  ;;  %v387_v40 = vsel %vm385_vm5, %v380_v37, %v2729_v34  ;;  %v408_v58 = vpop.permute.xlu2 %407 }
  0xbe   : > { %v386_v43 = vsel %vm385_vm5, %v378_v38, %v380_v37  ;;  %v456_v44 = vsel %vm425_vm1, %v375_v39, %v387_v40  ;;  %v412_v61 = vsel %vm409_vm3, %v2713_v18, %v408_v58 }
  0xbf   : > { %v452_v45 = vsel %vm425_vm1, %v374_v42, %v386_v43  ;;  %606 = vmatpush.bf16.msra.mxu1 %v456_v44  ;;  %v2816_v43 = vperm.slane %v733_v35, 0 }
  0xc0   : > { %577 = vmatpush.bf16.msra.mxu0 %v452_v45 }
  0xc4   : > { %v342_v46 = vpop.permute.xlu1 %341 }
  0xc5   : > { %v420_v47 = vpop.permute.xlu0 %419  ;;  %v350_v53 = vsel %vm349_vm6, %v342_v46, %v344_v41  ;;  %v334_v4 = vpop.permute.xlu2 %333 }
  0xc6   : > { %v424_v48 = vsel %vm421_vm0, %v418_v16, %v420_v47 }
  0xc7   : > { %v570_v49 = vsel %vm425_vm1, %v424_v48, 0 }
  0xc8   : > { %633 = vmatpush.bf16.msra.mxu2 %v570_v49 }
  0xcc   : > { %v354_v52 = vpop.permute.xlu1 %353 }
  0xcd   : > { %v362_v54 = vsel %vm361_vm7, %v354_v52, %v356_v50  ;;  %v346_v55 = vpop.permute.xlu0 %345  ;;  %v348_v20 = vpop.permute.xlu2 %347 }
  0xce   : > { %v440_v57 = vsel %vm425_vm1, %v350_v53, %v362_v54  ;;  %v351_v0 = vsel %vm349_vm6, %v344_v41, %v346_v55  ;;  %v352_v24 = vsel %vm349_vm6, %v346_v55, %v348_v20  ;;  %v2813_v41 = vperm.slane %v733_v35, 1 }
  0xcf   : > { %578 = vmatpush.bf16.msra.mxu0 %v440_v57 }
  0xd4   : > { %v396_v59 = vpop.permute.xlu1 %395 }
  0xd5   : > { %v400_v62 = vsel %vm397_vm2, %v2711_v15, %v396_v59  ;;  %v358_v63 = vpop.permute.xlu0 %357  ;;  %v482_v15 = vld [vmem:[%s3789_s3] sm:$0xff] }
  0xd6   : > { %v363_v1 = vsel %vm361_vm7, %v356_v50, %v358_v63  ;;  %v472_v2 = vsel %vm425_vm1, %v400_v62, %v412_v61  ;;  %492 = vperm.xlu2 %2369, %v482_v15  }
  0xd7   : > { %v444_v3 = vsel %vm425_vm1, %v351_v0, %v363_v1  ;;  %634 = vmatpush.bf16.msra.mxu2 %v472_v2 }
  0xd8   : > { %607 = vmatpush.bf16.msra.mxu1 %v444_v3 }
  0xdc   : > { %v332_v5 = vpop.permute.xlu1 %331 }
  0xdd   : > { %v330_v6 = vpop.permute.xlu0 %329  ;;  %v339_v7 = vsel %vm337_vm8, %v332_v5, %v334_v4 }
  0xde   : > { %v338_v8 = vsel %vm337_vm8, %v330_v6, %v332_v5  ;;  %v432_v12 = vsel %vm425_vm1, %v2651_v10, %v339_v7  ;;  %507 = vperm.xlu2 %2369, %v485_v29  }
  0xdf   : > { %v428_v14 = vsel %vm425_vm1, %v2653_v11, %v338_v8  ;;  %608 = vmatpush.bf16.msra.mxu1 %v432_v12  ;;  %v2827_v8 = vperm.slane %v733_v35, 2 }
  0xe0   : > { %579 = vmatpush.bf16.msra.mxu0 %v428_v14 }
  0xe2   : > { %2112 = vmatmul.msk.bf16.vlgmr.msra.gmra.mxu1 %vm550_vm9, %v2263_v13 }
  0xe3   : > { %2108 = vmatmul.msk.bf16.vlgmr.msra.gmra.mxu0 %vm550_vm9, %v2263_v13 }
  0xe4   : > { %v384_v16 = vpop.permute.xlu1 %383 }
  0xe5   : > { %v388_v10 = vsel %vm385_vm5, %v2729_v34, %v384_v16  ;;  %v372_v17 = vpop.permute.xlu0 %371 }
  0xe6   : > { %v376_v11 = vsel %vm373_vm4, %v2719_v25, %v372_v17  ;;  %517 = vperm.xlu2 %2369, %v487_v31  }
  0xe7   : > { %v460_v18 = vsel %vm425_vm1, %v376_v11, %v388_v10 }
  0xe8   : > { %635 = vmatpush.bf16.msra.mxu2 %v460_v18 }
  0xec   : > { %v336_v21 = vpop.permute.xlu1 %335 }
  0xed   : > { %v360_v22 = vpop.permute.xlu0 %359  ;;  %v340_v25 = vsel %vm337_vm8, %v334_v4, %v336_v21 }
  0xee   : > { %v364_v23 = vsel %vm361_vm7, %v358_v63, %v360_v22  ;;  %v436_v28 = vsel %vm425_vm1, %v2649_v9, %v340_v25  ;;  %v489_v9 = vld [vmem:[%s3789_s3 + $0x38] sm:$0xff] }
  0xef   : > { %v448_v27 = vsel %vm425_vm1, %v352_v24, %v364_v23  ;;  %527 = vperm.xlu1 %2371, %v489_v9  }
  0xf0   : > { %636 = vmatpush.bf16.msra.mxu2 %v448_v27 }
  0xf2   : > { %2113 = vmatmul.msk.bf16.gmra.mxu1 %vm550_vm9, %v2264_v26 }
  0xf3   : > { %2109 = vmatmul.msk.bf16.gmra.mxu0 %vm550_vm9, %v2264_v26 }
  0xf4   : > { %637 = vmatpush.bf16.msra.mxu2 %v436_v28 }
  0xf5   : > { %v498_v49 = vpop.permute.xlu0 %497 }
  0xf7   : > { %2116 = vmatmul.msk.bf16.vlgmr.msra.gmra.mxu2 %vm550_vm9, %v2263_v13 }
 0x102   : > { %2114 = vmatmul.msk.bf16.gmra.mxu1 %vm550_vm9, %v2265_v32 }
 0x103   : > { %2110 = vmatmul.msk.bf16.gmra.mxu0 %vm550_vm9, %v2265_v32 }
 0x107   : > { %2117 = vmatmul.msk.bf16.gmra.mxu2 %vm550_vm9, %v2264_v26 }
 0x112   : > { %2115 = vmatmul.msk.bf16.gmra.mxu1 %vm550_vm9, %v2266_v33 }
 0x113   : > { %2111 = vmatmul.msk.bf16.gmra.mxu0 %vm550_vm9, %v2266_v33 }
 0x117   : > { %2118 = vmatmul.msk.bf16.gmra.mxu2 %vm550_vm9, %v2265_v32 }
 0x118   : > { %v503_v1 = vpop.permute.xlu1 %502 }
 0x122   : > { %v2842_v29 = vpop.permute.xlu1 %512 }
 0x127   : > { %2119 = vmatmul.msk.bf16.gmra.mxu2 %vm550_vm9, %v2266_v33 }
 0x130   : > { %v493_v34 = vpop.permute.xlu2 %492 }
 0x138   : > { %v2832_v10 = vpop.permute.xlu2 %507 }
 0x15f   : > { %v610_v37 = vpop.f32.mrf.mxu1 }
 0x160   : > { %v581_v38 = vpop.f32.mrf.mxu0  ;;  %v611_v39 = vadd.f32 %v610_v37, %v493_v34 }
 0x161   : > { %v582_v40 = vadd.f32 %v581_v38, %v493_v34 }
 0x162   : > { %vm661_vm10 = vcmp.gt.f32.partialorder %v611_v39, 0.0  ;;  %v686_v42 = vmul.f32 %v2811_v36, %v611_v39 }
 0x163   : > { %vm660_vm11 = vcmp.gt.f32.partialorder %v582_v40, 0.0  ;;  %v685_v44 = vmul.f32 %v2811_v36, %v582_v40 }
 0x164   : > { %v710_v45 = vsel %vm661_vm10, %v611_v39, %v686_v42 }
 0x165   : > { %v709_v46 = vsel %vm660_vm11, %v582_v40, %v685_v44  ;;  %v742_v47 = vmul.f32 %v2813_v41, %v710_v45 }
 0x166   : > { %v741_v48 = vmul.f32 %v2816_v43, %v709_v46 }
 0x167   : > { %v612_v50 = vpop.f32.mrf.mxu1 }
 0x168   : > { %v583_v52 = vpop.f32.mrf.mxu0  ;;  %v613_v53 = vadd.f32 %v612_v50, %v498_v49  ;;  %v783_v54 = vpack.c.bf16 %v742_v47, %v741_v48 }
 0x169   : > { %v584_v55 = vadd.f32 %v583_v52, %v498_v49 }
 0x16a   : > { %vm664_vm12 = vcmp.gt.f32.partialorder %v613_v53, 0.0  ;;  %v689_v56 = vmul.f32 %v2811_v36, %v613_v53  ;;  %815 = vrot.lane.b32.xlu2 %v783_v54, %s2521_s10 }
 0x16b   : > { %vm663_vm13 = vcmp.gt.f32.partialorder %v584_v55, 0.0  ;;  %v688_v57 = vmul.f32 %v2811_v36, %v584_v55 }
 0x16c   : > { %v713_v58 = vsel %vm664_vm12, %v613_v53, %v689_v56  ;;  %v2855_v53 = vpop.permute.xlu0 %522 }
 0x16d   : > { %v712_v59 = vsel %vm663_vm13, %v584_v55, %v688_v57  ;;  %v745_v60 = vmul.f32 %v2813_v41, %v713_v58 }
 0x16e   : > { %v744_v61 = vmul.f32 %v2816_v43, %v712_v59  ;;  %v2859_v59 = vpop.permute.xlu2 %517 }
 0x16f   : > { %v615_v62 = vpop.f32.mrf.mxu1 }
 0x170   : > { %v586_v63 = vpop.f32.mrf.mxu0  ;;  %v785_v0 = vpack.c.bf16 %v745_v60, %v744_v61  ;;  %v616_v5 = vadd.f32 %v615_v62, %v503_v1 }
 0x171   : > { %v587_v4 = vadd.f32 %v586_v63, %v503_v1 }
 0x172   : > { %819 = vrot.lane.b32.xlu1 %v785_v0, %s2521_s10  ;;  %v692_v14 = vmul.f32 %v2811_v36, %v616_v5  ;;  %vm667_vm9 = vcmp.gt.f32.partialorder %v616_v5, 0.0 }
 0x173   : > { %v691_v13 = vmul.f32 %v2811_v36, %v587_v4  ;;  %vm666_vm15 = vcmp.gt.f32.partialorder %v587_v4, 0.0 }
 0x174   : > { %v716_v20 = vsel %vm667_vm9, %v616_v5, %v692_v14  ;;  %v2872_v14 = vpop.permute.xlu1 %527 }
 0x175   : > { %v715_v19 = vsel %vm666_vm15, %v587_v4, %v691_v13  ;;  %v748_v27 = vmul.f32 %v2813_v41, %v716_v20 }
 0x176   : > { %v747_v26 = vmul.f32 %v2816_v43, %v715_v19 }
 0x177   : > { %v617_v2 = vpop.f32.mrf.mxu1 }
 0x178   : > { %v588_v3 = vpop.f32.mrf.mxu0  ;;  %v618_v18 = vadd.f32 %v617_v2, %v2832_v10  ;;  %v787_v35 = vpack.c.bf16 %v748_v27, %v747_v26 }
 0x179   : > { %v589_v21 = vadd.f32 %v588_v3, %v2832_v10 }
 0x17a   : > { %v639_v6 = vpop.f32.mrf.mxu2  ;;  %v695_v25 = vmul.f32 %v2811_v36, %v618_v18  ;;  %vm670_vm11 = vcmp.gt.f32.partialorder %v618_v18, 0.0 }
 0x17b   : > { %v640_v7 = vadd.f32 %v639_v6, %v493_v34  ;;  %v694_v30 = vmul.f32 %v2811_v36, %v589_v21  ;;  %vm669_vm12 = vcmp.gt.f32.partialorder %v589_v21, 0.0 }
 0x17c   : > { %v719_v38 = vsel %vm670_vm11, %v618_v18, %v695_v25 }
 0x17d   : > { %vm662_vm14 = vcmp.gt.f32.partialorder %v640_v7, 0.0  ;;  %v687_v12 = vmul.f32 %v2811_v36, %v640_v7  ;;  %v718_v39 = vsel %vm669_vm12, %v589_v21, %v694_v30 }
 0x17e   : > { %v750_v48 = vmul.f32 %v2816_v43, %v718_v39 }
 0x17f   : > { %v711_v15 = vsel %vm662_vm14, %v640_v7, %v687_v12  ;;  %v620_v16 = vpop.f32.mrf.mxu1 }
 0x180   : > { %v591_v17 = vpop.f32.mrf.mxu0  ;;  %v743_v11 = vmul.f32 %v2827_v8, %v711_v15  ;;  %v621_v9 = vadd.f32 %v620_v16, %v2842_v29 }
 0x181   : > { %v592_v31 = vadd.f32 %v591_v17, %v2842_v29 }
 0x182   : > { %v641_v22 = vpop.f32.mrf.mxu2  ;;  %v784_v23 = vpack.c.bf16 %v743_v11, %v743_v11  ;;  %v698_v45 = vmul.f32 %v2811_v36, %v621_v9  ;;  %vm673_vm14 = vcmp.gt.f32.partialorder %v621_v9, 0.0 }
 0x183   : > { %v642_v24 = vadd.f32 %v641_v22, %v498_v49  ;;  %v697_v44 = vmul.f32 %v2811_v36, %v592_v31  ;;  %vm672_vm13 = vcmp.gt.f32.partialorder %v592_v31, 0.0  ;;  %v751_v49 = vmul.f32 %v2813_v41, %v719_v38 }
 0x184   : > { %817 = vrot.lane.b32.xlu0 %v784_v23, %s2521_s10  ;;  %v722_v52 = vsel %vm673_vm14, %v621_v9, %v698_v45 }
 0x185   : > { %vm665_vm10 = vcmp.gt.f32.partialorder %v642_v24, 0.0  ;;  %v690_v28 = vmul.f32 %v2811_v36, %v642_v24  ;;  %v721_v50 = vsel %vm672_vm13, %v592_v31, %v697_v44  ;;  %v789_v61 = vpack.c.bf16 %v751_v49, %v750_v48 }
 0x186   : > { %v753_v62 = vmul.f32 %v2816_v43, %v721_v50  ;;  %v754_v63 = vmul.f32 %v2813_v41, %v722_v52 }
 0x187   : > { %v714_v32 = vsel %vm665_vm10, %v642_v24, %v690_v28  ;;  %v622_v33 = vpop.f32.mrf.mxu1 }
 0x188   : > { %v593_v34 = vpop.f32.mrf.mxu0  ;;  %v746_v37 = vmul.f32 %v2827_v8, %v714_v32  ;;  %v623_v0 = vadd.f32 %v622_v33, %v2859_v59  ;;  %v791_v19 = vpack.c.bf16 %v754_v63, %v753_v62 }
 0x189   : > { %v594_v4 = vadd.f32 %v593_v34, %v2859_v59 }
 0x18a   : > { %v644_v40 = vpop.f32.mrf.mxu2  ;;  %v786_v42 = vpack.c.bf16 %v746_v37, %v746_v37  ;;  %v701_v16 = vmul.f32 %v2811_v36, %v623_v0  ;;  %vm676_vm12 = vcmp.gt.f32.partialorder %v623_v0, 0.0 }
 0x18b   : > { %v645_v46 = vadd.f32 %v644_v40, %v503_v1  ;;  %vm675_vm13 = vcmp.gt.f32.partialorder %v594_v4, 0.0 }
 0x18c   : > { %823 = vrot.lane.b32.xlu0 %v787_v35, %s2521_s10  ;;  %821 = vrot.lane.b32.xlu2 %v786_v42, %s2521_s10  ;;  %v725_v26 = vsel %vm676_vm12, %v623_v0, %v701_v16 }
 0x18d   : > { %vm668_vm15 = vcmp.gt.f32.partialorder %v645_v46, 0.0  ;;  %v693_v47 = vmul.f32 %v2811_v36, %v645_v46  ;;  %v757_v38 = vmul.f32 %v2813_v41, %v725_v26 }
 0x18f   : > { %v717_v54 = vsel %vm668_vm15, %v645_v46, %v693_v47  ;;  %v625_v55 = vpop.f32.mrf.mxu1 }
 0x190   : > { %v596_v56 = vpop.f32.mrf.mxu0  ;;  %v626_v57 = vadd.f32 %v625_v55, %v2855_v53  ;;  %v749_v58 = vmul.f32 %v2827_v8, %v717_v54 }
 0x191   : > { %v597_v60 = vadd.f32 %v596_v56, %v2855_v53 }
 0x192   : > { %vm679_vm9 = vcmp.gt.f32.partialorder %v626_v57, 0.0  ;;  %v704_v1 = vmul.f32 %v2811_v36, %v626_v57  ;;  %v646_v2 = vpop.f32.mrf.mxu2  ;;  %v788_v3 = vpack.c.bf16 %v749_v58, %v749_v58 }
 0x193   : > { %vm678_vm10 = vcmp.gt.f32.partialorder %v597_v60, 0.0  ;;  %v703_v5 = vmul.f32 %v2811_v36, %v597_v60  ;;  %v647_v6 = vadd.f32 %v646_v2, %v2832_v10  ;;  %v700_v10 = vmul.f32 %v2811_v36, %v594_v4 }
 0x194   : > { %v728_v7 = vsel %vm679_vm9, %v626_v57, %v704_v1  ;;  %827 = vrot.lane.b32.xlu2 %v789_v61, %s2521_s10  ;;  %825 = vrot.lane.b32.xlu1 %v788_v3, %s2521_s10  ;;  %vm765_vm9 = vcmask 150528  }
 0x195   : > { %v727_v12 = vsel %vm678_vm10, %v597_v60, %v703_v5  ;;  %vm671_vm11 = vcmp.gt.f32.partialorder %v647_v6, 0.0  ;;  %v696_v13 = vmul.f32 %v2811_v36, %v647_v6  ;;  %v2875_v15 = vmul.f32 %v2813_v41, %v728_v7  ;;  %766 = vst.msk [vmem:[#allocation2] sm:$0xf] %vm765_vm9, %v2520_v51 }
 0x196   : > { %v2879_v17 = vmul.f32 %v2816_v43, %v727_v12  ;;  %v724_v30 = vsel %vm675_vm13, %v594_v4, %v700_v10  ;;  %767 = vst.msk [vmem:[#allocation2 + $0x10] sm:$0xf] %vm765_vm9, %v2520_v51 }
 0x197   : > { %v720_v11 = vsel %vm671_vm11, %v647_v6, %v696_v13  ;;  %v627_v18 = vpop.f32.mrf.mxu1  ;;  %v756_v37 = vmul.f32 %v2816_v43, %v724_v30  ;;  %768 = vst.msk [vmem:[#allocation2 + $0x20] sm:$0xf] %vm765_vm9, %v2520_v51  ;;  %vm774_vm11 = vcmask 1043608  }
 0x198   : > { %v598_v20 = vpop.f32.mrf.mxu0  ;;  %v628_v21 = vadd.f32 %v627_v18, %v2872_v14  ;;  %v752_v22 = vmul.f32 %v2827_v8, %v720_v11  ;;  %v795_v23 = vpack.c.bf16 %v2875_v15, %v2879_v17  ;;  %769 = vst.msk [vmem:[#allocation2 + $0x30] sm:$0xf] %vm765_vm9, %v2520_v51 }
 0x199   : > { %v599_v24 = vadd.f32 %v598_v20, %v2872_v14  ;;  %770 = vst.msk [vmem:[#allocation2 + $0x40] sm:$0xf] %vm765_vm9, %v2520_v51 }
 0x19a   : > { %vm682_vm14 = vcmp.gt.f32.partialorder %v628_v21, 0.0  ;;  %v707_v27 = vmul.f32 %v2811_v36, %v628_v21  ;;  %v649_v25 = vpop.f32.mrf.mxu2  ;;  %v790_v28 = vpack.c.bf16 %v752_v22, %v752_v22  ;;  %771 = vst.msk [vmem:[#allocation2 + $0x50] sm:$0xf] %vm765_vm9, %v2520_v51 }
 0x19b   : > { %vm681_vm15 = vcmp.gt.f32.partialorder %v599_v24, 0.0  ;;  %v706_v31 = vmul.f32 %v2811_v36, %v599_v24  ;;  %v650_v9 = vadd.f32 %v649_v25, %v2842_v29  ;;  %772 = vst.msk [vmem:[#allocation2 + $0x60] sm:$0xf] %vm765_vm9, %v2520_v51 }
 0x19c   : > { %v731_v32 = vsel %vm682_vm14, %v628_v21, %v707_v27  ;;  %829 = vrot.lane.b32.xlu0 %v790_v28, %s2521_s10  ;;  %831 = vrot.lane.b32.xlu1 %v791_v19, %s2521_s10  ;;  %773 = vst.msk [vmem:[#allocation2 + $0x70] sm:$0xf] %vm765_vm9, %v2520_v51  ;;  %vm863_vm9 = vcmask 154624  }
 0x19d   : > { %v730_v33 = vsel %vm681_vm15, %v599_v24, %v706_v31  ;;  %vm674_vm10 = vcmp.gt.f32.partialorder %v650_v9, 0.0  ;;  %v699_v34 = vmul.f32 %v2811_v36, %v650_v9  ;;  %v763_v35 = vmul.f32 %v2813_v41, %v731_v32  ;;  %775 = vst.msk [vmem:[#allocation2 + $0xc] sm:$0xf] %vm774_vm11, %v2520_v51 }
 0x19e   : > { %v762_v29 = vmul.f32 %v2816_v43, %v730_v33  ;;  %v793_v41 = vpack.c.bf16 %v757_v38, %v756_v37  ;;  %776 = vst.msk [vmem:[#allocation2 + $0x1c] sm:$0xf] %vm774_vm11, %v2520_v51  ;;  %vm905_vm15 = vcmask 1047556  }
 0x19f   : > { %v723_v39 = vsel %vm674_vm10, %v650_v9, %v699_v34  ;;  %777 = vst.msk [vmem:[#allocation2 + $0x2c] sm:$0xf] %vm774_vm11, %v2520_v51  ;;  %vm2947_vm10 = vmor %vm905_vm15, %vm774_vm11 }
 0x1a0   : > { %v755_v40 = vmul.f32 %v2827_v8, %v723_v39  ;;  %v797_v42 = vpack.c.bf16 %v763_v35, %v762_v29  ;;  %778 = vst.msk [vmem:[#allocation2 + $0x3c] sm:$0xf] %vm774_vm11, %v2520_v51 }
 0x1a1   : > { %779 = vst.msk [vmem:[#allocation2 + $0x4c] sm:$0xf] %vm774_vm11, %v2520_v51 }
 0x1a2   : > { %v651_v44 = vpop.f32.mrf.mxu2  ;;  %v792_v45 = vpack.c.bf16 %v755_v40, %v755_v40  ;;  %780 = vst.msk [vmem:[#allocation2 + $0x5c] sm:$0xf] %vm774_vm11, %v2520_v51 }
 0x1a3   : > { %v652_v43 = vadd.f32 %v651_v44, %v2859_v59  ;;  %781 = vst.msk [vmem:[#allocation2 + $0x6c] sm:$0xf] %vm774_vm11, %v2520_v51 }
 0x1a4   : > { %835 = vrot.lane.b32.xlu0 %v793_v41, %s2521_s10  ;;  %833 = vrot.lane.b32.xlu2 %v792_v45, %s2521_s10  ;;  %782 = vst.msk [vmem:[#allocation2 + $0x7c] sm:$0xf] %vm774_vm11, %v2520_v51 }
 0x1a5   : > { %vm677_vm12 = vcmp.gt.f32.partialorder %v652_v43, 0.0  ;;  %v702_v46 = vmul.f32 %v2811_v36, %v652_v43 }
 0x1a7   : > { %v726_v47 = vsel %vm677_vm12, %v652_v43, %v702_v46  ;;  %vm908_vm12 = vcmask 154628  }
 0x1a8   : > { %v758_v48 = vmul.f32 %v2827_v8, %v726_v47  ;;  %vm2958_vm11 = vmor %vm908_vm12, %vm425_vm1 }
 0x1aa   : > { %v654_v49 = vpop.f32.mrf.mxu2  ;;  %v794_v50 = vpack.c.bf16 %v758_v48, %v758_v48 }
 0x1ab   : > { %v655_v52 = vadd.f32 %v654_v49, %v2855_v53 }
 0x1ac   : > { %837 = vrot.lane.b32.xlu1 %v794_v50, %s2521_s10  ;;  %839 = vrot.lane.b32.xlu2 %v795_v23, %s2521_s10 }
 0x1ad   : > { %vm680_vm13 = vcmp.gt.f32.partialorder %v655_v52, 0.0  ;;  %v705_v54 = vmul.f32 %v2811_v36, %v655_v52 }
 0x1af   : > { %v729_v55 = vsel %vm680_vm13, %v655_v52, %v705_v54 }
 0x1b0   : > { %v761_v56 = vmul.f32 %v2827_v8, %v729_v55 }
 0x1b2   : > { %v656_v57 = vpop.f32.mrf.mxu2  ;;  %v796_v58 = vpack.c.bf16 %v761_v56, %v761_v56 }
 0x1b3   : > { %v657_v53 = vadd.f32 %v656_v57, %v2872_v14 }
 0x1b4   : > { %843 = vrot.lane.b32.xlu1 %v797_v42, %s2521_s10  ;;  %841 = vrot.lane.b32.xlu0 %v796_v58, %s2521_s10 }
 0x1b5   : > { %vm683_vm14 = vcmp.gt.f32.partialorder %v657_v53, 0.0  ;;  %v708_v59 = vmul.f32 %v2811_v36, %v657_v53 }
 0x1b7   : > { %v732_v60 = vsel %vm683_vm14, %v657_v53, %v708_v59 }
 0x1b8   : > { %v764_v51 = vmul.f32 %v2827_v8, %v732_v60 }
 0x1ba   : > { %v798_v61 = vpack.c.bf16 %v764_v51, %v764_v51 }
 0x1bc   : > { %845 = vrot.lane.b32.xlu2 %v798_v61, %s2521_s10 }
 0x1c4   : > { %v816_v62 = vpop.permute.xlu2 %815 }
 0x1c5   : > { %v847_v0 = vrot.slane %v816_v62, 4 }
 0x1c7   : > { %v864_v1 = vsel %vm863_vm9, %v847_v0, %v816_v62 }
 0x1c8   : > { %907 = vst.msk [vmem:[#allocation2] sm:$0xff] %vm2947_vm10, %v864_v1 }
 0x1cf   : > { %v2279_v13 = vld [vmem:[#allocation2 + $0x4] sm:$0xf]  ;;  %v2122_v14 = vld [vmem:[#allocation2] sm:$0xf] }
 0x1e4   : > { %v820_v36 = vpop.permute.xlu1 %819 }
 0x1e5   : > { %v849_v2 = vrot.slane %v820_v36, 4 }
 0x1e6   : > { %v822_v8 = vpop.permute.xlu2 %821 }
 0x1e7   : > { %v868_v3 = vsel %vm863_vm9, %v849_v2, %v820_v36  ;;  %v850_v4 = vrot.slane %v822_v8, 4 }
 0x1e8   : > { %911 = vst.msk [vmem:[#allocation2 + $0x10] sm:$0xff] %vm2947_vm10, %v868_v3 }
 0x1e9   : > { %v869_v6 = vsel %vm425_vm1, %v849_v2, %v850_v4 }
 0x1ea   : > { %v870_v7 = vsel %vm863_vm9, %v869_v6, %v822_v8 }
 0x1eb   : > { %912 = vst.msk [vmem:[#allocation2 + $0x18] sm:$0xff] %vm2958_vm11, %v870_v7 }
 0x1ee   : > { %v828_v12 = vpop.permute.xlu2 %827 }
 0x1ef   : > { %v853_v15 = vrot.slane %v828_v12, 4  ;;  %v2124_v16 = vld [vmem:[#allocation2 + $0x10] sm:$0xf0]  ;;  %v2281_v17 = vld [vmem:[#allocation2 + $0xc] sm:$0xf0] }
 0x1f0   : > { %v2966_v10 = vor.u32 %v2279_v13, %v2124_v16  ;;  %v2968_v11 = vor.u32 %v2281_v17, %v2122_v14 }
 0x1f1   : > { %v874_v18 = vsel %vm863_vm9, %v853_v15, %v828_v12 }
 0x1f2   : > { %915 = vst.msk [vmem:[#allocation2 + $0x30] sm:$0xff] %vm2947_vm10, %v874_v18  ;;  %1026 = vrot.lane.b32.xlu1 %v2966_v10, %s2519_s24  ;;  %1024 = vrot.lane.b32.xlu0 %v2968_v11, %s2519_s24  ;;  %v2132_v33 = vld [vmem:[#allocation2 + $0x18] sm:$0xf0]  ;;  %v2282_v34 = vld [vmem:[#allocation2 + $0x14] sm:$0xf0] }
 0x1f3   : > { %1233 = vrot.lane.b32.xlu2 %v2966_v10, %s2517_s22 }
 0x1f6   : > { %v818_v19 = vpop.permute.xlu0 %817 }
 0x1f7   : > { %v848_v20 = vrot.slane %v818_v19, 4 }
 0x1f9   : > { %v866_v21 = vsel %vm425_vm1, %v847_v0, %v848_v20  ;;  %v2285_v53 = vld [vmem:[#allocation2 + $0x2c] sm:$0xf0]  ;;  %v2140_v59 = vld [vmem:[#allocation2 + $0x30] sm:$0xf0] }
 0x1fa   : > { %v867_v22 = vsel %vm863_vm9, %v866_v21, %v818_v19  ;;  %1231 = vrot.lane.b32.xlu1 %v2968_v11, %s2517_s22  ;;  %1336 = vrot.lane.b32.xlu0 %v2966_v10, %s2518_s23 }
 0x1fb   : > { %910 = vst.msk [vmem:[#allocation2 + $0x8] sm:$0xff] %vm2958_vm11, %v867_v22  ;;  %1334 = vrot.lane.b32.xlu2 %v2968_v11, %s2518_s23 }
 0x1fe   : > { %v834_v23 = vpop.permute.xlu2 %833  ;;  %v824_v24 = vpop.permute.xlu0 %823 }
 0x1ff   : > { %v851_v26 = vrot.slane %v824_v24, 4  ;;  %v856_v44 = vrot.slane %v834_v23, 4 }
 0x201   : > { %v871_v27 = vsel %vm863_vm9, %v851_v26, %v824_v24 }
 0x202   : > { %913 = vst.msk [vmem:[#allocation2 + $0x20] sm:$0xff] %vm2947_vm10, %v871_v27  ;;  %1439 = vrot.lane.b32.xlu1 %v2966_v10, %s2515_s20  ;;  %1437 = vrot.lane.b32.xlu0 %v2968_v11, %s2515_s20  ;;  %v2280_v25 = vld [vmem:[#allocation2 + $0xc] sm:$0xf]  ;;  %v2130_v31 = vld [vmem:[#allocation2 + $0x8] sm:$0xf] }
 0x203   : > { %1542 = vrot.lane.b32.xlu2 %v2966_v10, %s2516_s21  ;;  %v3001_v35 = vor.u32 %v2280_v25, %v2132_v33  ;;  %v3006_v29 = vor.u32 %v2282_v34, %v2130_v31  ;;  %v2197_v25 = vld [vmem:[#allocation2 + $0x8] sm:$0xf] }
 0x206   : > { %v826_v28 = vpop.permute.xlu1 %825  ;;  %v2998_v30 = vpop.permute.xlu2 %839 }
 0x207   : > { %v852_v9 = vrot.slane %v826_v28, 4  ;;  %v859_v32 = vrot.slane %v2998_v30, 4 }
 0x209   : > { %v872_v37 = vsel %vm425_vm1, %v851_v26, %v852_v9  ;;  %v883_v38 = vsel %vm863_vm9, %v859_v32, %v2998_v30  ;;  %v2138_v55 = vld [vmem:[#allocation2 + $0x20] sm:$0xf]  ;;  %v2283_v56 = vld [vmem:[#allocation2 + $0x24] sm:$0xf] }
 0x20a   : > { %v873_v39 = vsel %vm863_vm9, %v872_v37, %v826_v28  ;;  %921 = vst.msk [vmem:[#allocation2 + $0x60] sm:$0xff] %vm2947_vm10, %v883_v38  ;;  %1540 = vrot.lane.b32.xlu1 %v2968_v11, %s2516_s21  ;;  %1030 = vrot.lane.b32.xlu0 %v3001_v35, %s2519_s24  ;;  %v3045_v60 = vor.u32 %v2285_v53, %v2138_v55  ;;  %v2269_v28 = vld [vmem:[#allocation2 + $0x14] sm:$0xf0] }
 0x20b   : > { %914 = vst.msk [vmem:[#allocation2 + $0x28] sm:$0xff] %vm2958_vm11, %v873_v39  ;;  %1028 = vrot.lane.b32.xlu2 %v3006_v29, %s2519_s24  ;;  %v3047_v51 = vor.u32 %v2283_v56, %v2140_v59  ;;  %v2198_v30 = vor.u32 %v2269_v28, %v2197_v25 }
 0x20e   : > { %v832_v40 = vpop.permute.xlu1 %831  ;;  %v830_v42 = vpop.permute.xlu0 %829 }
 0x20f   : > { %v855_v41 = vrot.slane %v832_v40, 4  ;;  %v854_v45 = vrot.slane %v830_v42, 4 }
 0x211   : > { %v877_v43 = vsel %vm863_vm9, %v855_v41, %v832_v40  ;;  %v878_v46 = vsel %vm425_vm1, %v855_v41, %v856_v44  ;;  %v875_v47 = vsel %vm425_vm1, %v853_v15, %v854_v45 }
 0x212   : > { %v879_v48 = vsel %vm863_vm9, %v878_v46, %v834_v23  ;;  %917 = vst.msk [vmem:[#allocation2 + $0x40] sm:$0xff] %vm2947_vm10, %v877_v43  ;;  %v876_v49 = vsel %vm863_vm9, %v875_v47, %v830_v42  ;;  %1237 = vrot.lane.b32.xlu1 %v3001_v35, %s2517_s22  ;;  %1235 = vrot.lane.b32.xlu0 %v3006_v29, %s2517_s22  ;;  %v2146_v14 = vld [vmem:[#allocation2 + $0x28] sm:$0xf]  ;;  %v2284_v5 = vld [vmem:[#allocation2 + $0x2c] sm:$0xf] }
 0x213   : > { %918 = vst.msk [vmem:[#allocation2 + $0x48] sm:$0xff] %vm2958_vm11, %v879_v48  ;;  %1340 = vrot.lane.b32.xlu2 %v3001_v35, %s2518_s23  ;;  %v2209_v24 = vld [vmem:[#allocation2 + $0x28] sm:$0xf] }
 0x214   : > { %916 = vst.msk [vmem:[#allocation2 + $0x38] sm:$0xff] %vm2958_vm11, %v876_v49 }
 0x216   : > { %v836_v50 = vpop.permute.xlu0 %835  ;;  %v846_v0 = vpop.permute.xlu2 %845 }
 0x217   : > { %v857_v52 = vrot.slane %v836_v50, 4  ;;  %v862_v2 = vrot.slane %v846_v0, 4 }
 0x219   : > { %v880_v54 = vsel %vm863_vm9, %v857_v52, %v836_v50  ;;  %v2154_v38 = vld [vmem:[#allocation2 + $0x40] sm:$0xf] }
 0x21a   : > { %919 = vst.msk [vmem:[#allocation2 + $0x50] sm:$0xff] %vm2947_vm10, %v880_v54  ;;  %1338 = vrot.lane.b32.xlu1 %v3006_v29, %s2518_s23  ;;  %1443 = vrot.lane.b32.xlu0 %v3001_v35, %s2515_s20  ;;  %v2221_v21 = vld [vmem:[#allocation2 + $0x48] sm:$0xf]  ;;  %v2288_v47 = vld [vmem:[#allocation2 + $0x4c] sm:$0xf] }
 0x21b   : > { %1441 = vrot.lane.b32.xlu2 %v3006_v29, %s2515_s20  ;;  %v2286_v63 = vld [vmem:[#allocation2 + $0x34] sm:$0xf0]  ;;  %v2148_v20 = vld [vmem:[#allocation2 + $0x38] sm:$0xf0] }
 0x21c   : > { %v3076_v15 = vor.u32 %v2286_v63, %v2146_v14  ;;  %v3084_v23 = vor.u32 %v2284_v5, %v2148_v20  ;;  %v2272_v26 = vld [vmem:[#allocation2 + $0x34] sm:$0xf0]  ;;  %v2291_v14 = vld [vmem:[#allocation2 + $0x64] sm:$0xf] }
 0x21d   : > { %v2210_v27 = vor.u32 %v2272_v26, %v2209_v24 }
 0x21e   : > { %v838_v57 = vpop.permute.xlu1 %837 }
 0x21f   : > { %v858_v58 = vrot.slane %v838_v57, 4 }
 0x221   : > { %v881_v61 = vsel %vm425_vm1, %v857_v52, %v858_v58  ;;  %v2156_v9 = vld [vmem:[#allocation2 + $0x50] sm:$0xf0]  ;;  %v2289_v37 = vld [vmem:[#allocation2 + $0x4c] sm:$0xf0] }
 0x222   : > { %v882_v62 = vsel %vm863_vm9, %v881_v61, %v838_v57  ;;  %1032 = vrot.lane.b32.xlu1 %v3045_v60, %s2519_s24  ;;  %1241 = vrot.lane.b32.xlu0 %v3047_v51, %s2517_s22  ;;  %v3112_v39 = vor.u32 %v2289_v37, %v2154_v38  ;;  %v2162_v57 = vld [vmem:[#allocation2 + $0x48] sm:$0xf] }
 0x223   : > { %920 = vst.msk [vmem:[#allocation2 + $0x58] sm:$0xff] %vm2958_vm11, %v882_v62  ;;  %1034 = vrot.lane.b32.xlu2 %v3047_v51, %s2519_s24 }
 0x226   : > { %v844_v1 = vpop.permute.xlu1 %843  ;;  %v842_v36 = vpop.permute.xlu0 %841 }
 0x227   : > { %v861_v8 = vrot.slane %v844_v1, 4  ;;  %v860_v3 = vrot.slane %v842_v36, 4 }
 0x229   : > { %v886_v4 = vsel %vm863_vm9, %v861_v8, %v844_v1  ;;  %v887_v6 = vsel %vm425_vm1, %v861_v8, %v862_v2  ;;  %v884_v7 = vsel %vm425_vm1, %v859_v32, %v860_v3  ;;  %v2287_v32 = vld [vmem:[#allocation2 + $0x44] sm:$0xf]  ;;  %vm1080_vm1 = vcmask 523264  }
 0x22a   : > { %v888_v12 = vsel %vm863_vm9, %v887_v6, %v846_v0  ;;  %923 = vst.msk [vmem:[#allocation2 + $0x70] sm:$0xff] %vm2947_vm10, %v886_v4  ;;  %v885_v13 = vsel %vm863_vm9, %v884_v7, %v842_v36  ;;  %1344 = vrot.lane.b32.xlu1 %v3047_v51, %s2518_s23  ;;  %1342 = vrot.lane.b32.xlu0 %v3045_v60, %s2518_s23  ;;  %v2275_v19 = vld [vmem:[#allocation2 + $0x54] sm:$0xf0]  ;;  %v2164_v43 = vld [vmem:[#allocation2 + $0x58] sm:$0xf0] }
 0x22b   : > { %924 = vst.msk [vmem:[#allocation2 + $0x78] sm:$0xff] %vm2958_vm11, %v888_v12  ;;  %1239 = vrot.lane.b32.xlu2 %v3045_v60, %s2517_s22  ;;  %v2222_v22 = vor.u32 %v2275_v19, %v2221_v21  ;;  %v3104_v33 = vor.u32 %v2287_v32, %v2156_v9  ;;  %v3134_v48 = vor.u32 %v2288_v47, %v2164_v43  ;;  %v2290_v54 = vld [vmem:[#allocation2 + $0x54] sm:$0xf0] }
 0x22c   : > { %922 = vst.msk [vmem:[#allocation2 + $0x68] sm:$0xff] %vm2958_vm11, %v885_v13  ;;  %v3148_v58 = vor.u32 %v2290_v54, %v2162_v57 }
 0x231   : > { %v2172_v7 = vld [vmem:[#allocation2 + $0x70] sm:$0xf0]  ;;  %v2293_v19 = vld [vmem:[#allocation2 + $0x6c] sm:$0xf0] }
 0x232   : > { %1445 = vrot.lane.b32.xlu1 %v3045_v60, %s2515_s20  ;;  %1036 = vrot.lane.b32.xlu0 %v3076_v15, %s2519_s24  ;;  %v2278_v16 = vld [vmem:[#allocation2 + $0x74] sm:$0xf0]  ;;  %v3185_v63 = vor.u32 %v2291_v14, %v2172_v7  ;;  %v2180_v7 = vld [vmem:[#allocation2 + $0x78] sm:$0xf0] }
 0x233   : > { %1447 = vrot.lane.b32.xlu2 %v3047_v51, %s2515_s20  ;;  %v2233_v17 = vld [vmem:[#allocation2 + $0x68] sm:$0xf]  ;;  %v2294_v47 = vld [vmem:[#allocation2 + $0x74] sm:$0xf0] }
 0x234   : > { %v2234_v18 = vor.u32 %v2278_v16, %v2233_v17  ;;  %v2178_v43 = vld [vmem:[#allocation2 + $0x68] sm:$0xf] }
 0x236   : > { %1220 = vmatpush.bf16.msrb.mxu0 %v2234_v18 }
 0x23a   : > { %1221 = vmatpush.bf16.msrb.mxu0 %v2222_v22  ;;  %1548 = vrot.lane.b32.xlu1 %v3045_v60, %s2516_s21  ;;  %v2170_v22 = vld [vmem:[#allocation2 + $0x60] sm:$0xf] }
 0x23b   : > { %1550 = vrot.lane.b32.xlu2 %v3047_v51, %s2516_s21  ;;  %1348 = vrot.lane.b32.xlu0 %v3084_v23, %s2518_s23  ;;  %v3202_v24 = vor.u32 %v2293_v19, %v2170_v22 }
 0x23e   : > { %1222 = vmatpush.bf16.msrb.mxu0 %v2210_v27 }
 0x242   : > { %1223 = vmatpush.bf16.msrb.mxu0 %v2198_v30  ;;  %1038 = vrot.lane.b32.xlu1 %v3084_v23, %s2519_s24 }
 0x243   : > { %1451 = vrot.lane.b32.xlu0 %v3084_v23, %s2515_s20  ;;  %1245 = vrot.lane.b32.xlu2 %v3084_v23, %s2517_s22 }
 0x24a   : > { %1243 = vrot.lane.b32.xlu1 %v3076_v15, %s2517_s22 }
 0x24b   : > { %1552 = vrot.lane.b32.xlu0 %v3076_v15, %s2516_s21  ;;  %1346 = vrot.lane.b32.xlu2 %v3076_v15, %s2518_s23 }
 0x24d   : > { %v1234_v31 = vpop.permute.xlu2 %1233 }
 0x252   : > { %1249 = vrot.lane.b32.xlu1 %v3104_v33, %s2517_s22 }
 0x253   : > { %1449 = vrot.lane.b32.xlu2 %v3076_v15, %s2515_s20  ;;  %1042 = vrot.lane.b32.xlu0 %v3104_v33, %s2519_s24 }
 0x255   : > { %v1335_v34 = vpop.permute.xlu2 %1334 }
 0x25a   : > { %1350 = vrot.lane.b32.xlu1 %v3112_v39, %s2518_s23 }
 0x25b   : > { %1040 = vrot.lane.b32.xlu2 %v3112_v39, %s2519_s24  ;;  %1247 = vrot.lane.b32.xlu0 %v3112_v39, %s2517_s22 }
 0x25d   : > { %v3120_v40 = vpop.permute.xlu2 %1542 }
 0x25e   : > { %3808 = vst [vmem:[#allocation13_spill] sm:$0xff] %v3120_v40 }
 0x262   : > { %1556 = vrot.lane.b32.xlu1 %v3112_v39, %s2516_s21 }
 0x263   : > { %1352 = vrot.lane.b32.xlu2 %v3104_v33, %s2518_s23  ;;  %1455 = vrot.lane.b32.xlu0 %v3104_v33, %s2515_s20 }
 0x264   : > { %v1027_v42 = vpop.permute.xlu1 %1026  ;;  %v1025_v44 = vpop.permute.xlu0 %1024 }
 0x265   : > { %v1029_v41 = vpop.permute.xlu2 %1028  ;;  %v3129_v45 = vsel %vm337_vm8, %v1025_v44, %v1027_v42 }
 0x266   : > { %v3132_v46 = vsel %vm337_vm8, %v1027_v42, %v1029_v41 }
 0x26a   : > { %1659 = vrot.lane.b32.xlu1 %v3112_v39, %s2513_s18 }
 0x26b   : > { %1453 = vrot.lane.b32.xlu2 %v3112_v39, %s2515_s20  ;;  %1253 = vrot.lane.b32.xlu0 %v3134_v48, %s2517_s22 }
 0x26c   : > { %v1232_v49 = vpop.permute.xlu1 %1231  ;;  %v1337_v50 = vpop.permute.xlu0 %1336 }
 0x26d   : > { %v1341_v52 = vpop.permute.xlu2 %1340  ;;  %v3143_v55 = vsel %vm349_vm6, %v1232_v49, %v1234_v31  ;;  %v3146_v56 = vsel %vm361_vm7, %v1335_v34, %v1337_v50 }
 0x272   : > { %1044 = vrot.lane.b32.xlu1 %v3148_v58, %s2519_s24 }
 0x273   : > { %1558 = vrot.lane.b32.xlu2 %v3104_v33, %s2516_s21  ;;  %1354 = vrot.lane.b32.xlu0 %v3148_v58, %s2518_s23 }
 0x274   : > { %v1440_v53 = vpop.permute.xlu1 %1439  ;;  %v1438_v59 = vpop.permute.xlu0 %1437 }
 0x275   : > { %v1442_v61 = vpop.permute.xlu2 %1441  ;;  %v3157_v62 = vsel %vm373_vm4, %v1438_v59, %v1440_v53 }
 0x276   : > { %v3160_v0 = vsel %vm373_vm4, %v1440_v53, %v1442_v61 }
 0x277   : > { %3809 = vst [vmem:[#allocation14_spill] sm:$0xff] %v3160_v0 }
 0x27a   : > { %1356 = vrot.lane.b32.xlu1 %v3134_v48, %s2518_s23 }
 0x27b   : > { %1046 = vrot.lane.b32.xlu2 %v3134_v48, %s2519_s24  ;;  %1457 = vrot.lane.b32.xlu0 %v3148_v58, %s2515_s20 }
 0x27c   : > { %v3168_v1 = vpop.permute.xlu1 %1540  ;;  %v1031_v36 = vpop.permute.xlu0 %1030 }
 0x27d   : > { %3810 = vst [vmem:[#allocation15_spill] sm:$0xff] %v3168_v1  ;;  %v1035_v2 = vpop.permute.xlu2 %1034  ;;  %v3171_v8 = vsel %vm337_vm8, %v1029_v41, %v1031_v36 }
 0x282   : > { %1459 = vrot.lane.b32.xlu1 %v3134_v48, %s2515_s20 }
 0x283   : > { %1251 = vrot.lane.b32.xlu2 %v3148_v58, %s2517_s22  ;;  %1560 = vrot.lane.b32.xlu0 %v3148_v58, %s2516_s21 }
 0x284   : > { %v1238_v3 = vpop.permute.xlu1 %1237  ;;  %v1236_v4 = vpop.permute.xlu0 %1235 }
 0x285   : > { %v1240_v6 = vpop.permute.xlu2 %1239  ;;  %v3180_v12 = vsel %vm349_vm6, %v1234_v31, %v1236_v4  ;;  %v3183_v13 = vsel %vm349_vm6, %v1236_v4, %v1238_v3 }
 0x28a   : > { %1050 = vrot.lane.b32.xlu1 %v3185_v63, %s2519_s24 }
 0x28b   : > { %1257 = vrot.lane.b32.xlu2 %v3185_v63, %s2517_s22  ;;  %1562 = vrot.lane.b32.xlu0 %v3134_v48, %s2516_s21 }
 0x28c   : > { %v1339_v16 = vpop.permute.xlu1 %1338  ;;  %v1444_v17 = vpop.permute.xlu0 %1443 }
 0x28d   : > { %v1448_v18 = vpop.permute.xlu2 %1447  ;;  %v3194_v5 = vsel %vm361_vm7, %v1337_v50, %v1339_v16  ;;  %v3197_v20 = vsel %vm361_vm7, %v1339_v16, %v1341_v52  ;;  %v3200_v21 = vsel %vm373_vm4, %v1442_v61, %v1444_v17  ;;  %v3242_v50 = vor.u32 %v2294_v47, %v2178_v43 }
 0x28e   : > { %3811 = vst [vmem:[#allocation16_spill] sm:$0xff] %v3200_v21 }
 0x292   : > { %1255 = vrot.lane.b32.xlu1 %v3202_v24, %s2517_s22 }
 0x293   : > { %1358 = vrot.lane.b32.xlu2 %v3202_v24, %s2518_s23  ;;  %1048 = vrot.lane.b32.xlu0 %v3202_v24, %s2519_s24 }
 0x294   : > { %v1033_v26 = vpop.permute.xlu1 %1032  ;;  %v1242_v27 = vpop.permute.xlu0 %1241 }
 0x295   : > { %v3210_v25 = vpop.permute.xlu2 %1550  ;;  %v3213_v28 = vsel %vm337_vm8, %v1033_v26, %v1035_v2  ;;  %v3216_v30 = vsel %vm349_vm6, %v1240_v6, %v1242_v27  ;;  %v2292_v6 = vld [vmem:[#allocation2 + $0x6c] sm:$0xf] }
 0x296   : > { %3812 = vst [vmem:[#allocation17_spill] sm:$0xff] %v3210_v25  ;;  %v3272_v16 = vor.u32 %v2292_v6, %v2180_v7 }
 0x29a   : > { %1463 = vrot.lane.b32.xlu1 %v3185_v63, %s2515_s20 }
 0x29b   : > { %1566 = vrot.lane.b32.xlu2 %v3185_v63, %s2516_s21  ;;  %1360 = vrot.lane.b32.xlu0 %v3185_v63, %s2518_s23 }
 0x29c   : > { %v1345_v31 = vpop.permute.xlu1 %1344  ;;  %v1343_v9 = vpop.permute.xlu0 %1342 }
 0x29d   : > { %v1246_v32 = vpop.permute.xlu2 %1245  ;;  %v3225_v34 = vsel %vm361_vm7, %v1343_v9, %v1345_v31 }
 0x2a2   : > { %1564 = vrot.lane.b32.xlu1 %v3202_v24, %s2516_s21 }
 0x2a3   : > { %1669 = vrot.lane.b32.xlu2 %v3185_v63, %s2513_s18  ;;  %1461 = vrot.lane.b32.xlu0 %v3202_v24, %s2515_s20 }
 0x2a4   : > { %v1446_v37 = vpop.permute.xlu1 %1445  ;;  %v1037_v38 = vpop.permute.xlu0 %1036 }
 0x2a5   : > { %v1347_v42 = vpop.permute.xlu2 %1346  ;;  %v3234_v44 = vsel %vm337_vm8, %v1035_v2, %v1037_v38  ;;  %v3237_v41 = vsel %vm373_vm4, %v1446_v37, %v1448_v18 }
 0x2a6   : > { %v3240_v49 = vsel %vm361_vm7, %v1345_v31, %v1347_v42 }
 0x2aa   : > { %1667 = vrot.lane.b32.xlu1 %v3202_v24, %s2513_s18 }
 0x2ab   : > { %1544 = vrot.lane.b32.xlu0 %v3006_v29, %s2516_s21  ;;  %1052 = vrot.lane.b32.xlu2 %v3242_v50, %s2519_s24 }
 0x2ac   : > { %v1549_v52 = vpop.permute.xlu1 %1548 }
 0x2ad   : > { %v1450_v54 = vpop.permute.xlu2 %1449  ;;  %v1349_v57 = vpop.permute.xlu0 %1348  ;;  %v3252_v53 = vsel %vm385_vm5, %v1549_v52, %v3210_v25 }
 0x2ae   : > { %3813 = vst [vmem:[#allocation18_spill] sm:$0xff] %v3252_v53  ;;  %v3255_v59 = vsel %vm361_vm7, %v1347_v42, %v1349_v57  ;;  %v3258_v61 = vsel %vm373_vm4, %v1448_v18, %v1450_v54 }
 0x2b2   : > { %1554 = vrot.lane.b32.xlu1 %v3084_v23, %s2516_s21 }
 0x2b3   : > { %1653 = vrot.lane.b32.xlu0 %v3047_v51, %s2513_s18  ;;  %1661 = vrot.lane.b32.xlu2 %v3104_v33, %s2513_s18 }
 0x2b4   : > { %v1039_v36 = vpop.permute.xlu1 %1038 }
 0x2b5   : > { %v1041_v2 = vpop.permute.xlu2 %1040  ;;  %v1452_v3 = vpop.permute.xlu0 %1451  ;;  %v3267_v4 = vsel %vm337_vm8, %v1037_v38, %v1039_v36 }
 0x2b6   : > { %v3270_v14 = vsel %vm373_vm4, %v1450_v54, %v1452_v3 }
 0x2b7   : > { %3814 = vst [vmem:[#allocation19_spill] sm:$0xff] %v3270_v14 }
 0x2ba   : > { %1643 = vrot.lane.b32.xlu1 %v2968_v11, %s2513_s18 }
 0x2bb   : > { %1651 = vrot.lane.b32.xlu2 %v3045_v60, %s2513_s18  ;;  %1054 = vrot.lane.b32.xlu0 %v3272_v16, %s2519_s24  ;;  %s3816_s24 = smov 91  }
 0x2bc   : > { %v1244_v17 = vpop.permute.xlu1 %1243 }
 0x2bd   : > { %v1353_v18 = vpop.permute.xlu2 %1352  ;;  %v3280_v19 = vpop.permute.xlu0 %1552  ;;  %v3283_v22 = vsel %vm349_vm6, %v1242_v27, %v1244_v17  ;;  %v3286_v26 = vsel %vm349_vm6, %v1244_v17, %v1246_v32 }
 0x2be   : > { %3815 = vst [vmem:[#allocation20_spill] sm:$0xff] %v3280_v19 }
 0x2c2   : > { %1665 = vrot.lane.b32.xlu1 %v3134_v48, %s2513_s18 }
 0x2c3   : > { %1645 = vrot.lane.b32.xlu2 %v2966_v10, %s2513_s18  ;;  %1546 = vrot.lane.b32.xlu0 %v3001_v35, %s2516_s21 }
 0x2c4   : > { %v3294_v31 = vpop.permute.xlu1 %1249 }
 0x2c5   : > { %v1454_v9 = vpop.permute.xlu2 %1453  ;;  %v3296_v37 = vpop.permute.xlu0 %1042 }
 0x2c6   : > { %v3300_v27 = vsel %vm337_vm8, %v1041_v2, %v3296_v37 }
 0x2ca   : > { %1772 = vrot.lane.b32.xlu1 %v3185_v63, %s3816_s24 }
 0x2cb   : > { %1655 = vrot.lane.b32.xlu2 %v3076_v15, %s2513_s18  ;;  %1663 = vrot.lane.b32.xlu0 %v3148_v58, %s2513_s18 }
 0x2cc   : > { %v1351_v32 = vpop.permute.xlu1 %1350 }
 0x2cd   : > { %v1559_v38 = vpop.permute.xlu2 %1558  ;;  %v1248_v42 = vpop.permute.xlu0 %1247  ;;  %v3309_v43 = vsel %vm361_vm7, %v1351_v32, %v1353_v18 }
 0x2d2   : > { %1647 = vrot.lane.b32.xlu1 %v3006_v29, %s2513_s18 }
 0x2d3   : > { %1762 = vrot.lane.b32.xlu2 %v3112_v39, %s3816_s24  ;;  %1770 = vrot.lane.b32.xlu0 %v3202_v24, %s3816_s24 }
 0x2d4   : > { %v1557_v47 = vpop.permute.xlu1 %1556 }
 0x2d5   : > { %v1047_v52 = vpop.permute.xlu2 %1046  ;;  %v1456_v54 = vpop.permute.xlu0 %1455  ;;  %v3318_v57 = vsel %vm385_vm5, %v1557_v47, %v1559_v38 }
 0x2d6   : > { %v3321_v36 = vsel %vm373_vm4, %v1454_v9, %v1456_v54 }
 0x2da   : > { %1766 = vrot.lane.b32.xlu1 %v3148_v58, %s3816_s24 }
 0x2db   : > { %1649 = vrot.lane.b32.xlu2 %v3001_v35, %s2513_s18  ;;  %1657 = vrot.lane.b32.xlu0 %v3084_v23, %s2513_s18 }
 0x2dc   : > { %v1660_v2 = vpop.permute.xlu1 %1659 }
 0x2dd   : > { %v1252_v3 = vpop.permute.xlu2 %1251  ;;  %v1254_v6 = vpop.permute.xlu0 %1253 }
 0x2de   : > { %v3331_v7 = vsel %vm349_vm6, %v3294_v31, %v1252_v3  ;;  %v3334_v17 = vsel %vm349_vm6, %v1252_v3, %v1254_v6 }
 0x2e2   : > { %1756 = vrot.lane.b32.xlu1 %v3047_v51, %s3816_s24 }
 0x2e3   : > { %1758 = vrot.lane.b32.xlu2 %v3076_v15, %s3816_s24  ;;  %1764 = vrot.lane.b32.xlu0 %v3104_v33, %s3816_s24 }
 0x2e4   : > { %v3342_v9 = vpop.permute.xlu1 %1044 }
 0x2e5   : > { %v3344_v32 = vpop.permute.xlu2 %1257  ;;  %v1355_v47 = vpop.permute.xlu0 %1354  ;;  %v3348_v25 = vsel %vm337_vm8, %v3342_v9, %v1047_v52 }
 0x2e6   : > { %v3351_v3 = vsel %vm361_vm7, %v1353_v18, %v1355_v47 }
 0x2ea   : > { %1261 = vrot.lane.b32.xlu1 %v3272_v16, %s2517_s22 }
 0x2eb   : > { %1875 = vrot.lane.b32.xlu2 %v3185_v63, %s3817_s15  ;;  %1259 = vrot.lane.b32.xlu0 %v3242_v50, %s2517_s22  ;;  %s2296_s22 = smul.u32 24, %s2586_s4 }
 0x2ec   : > { %v1357_v6 = vpop.permute.xlu1 %1356 }
 0x2ed   : > { %v1359_v19 = vpop.permute.xlu2 %1358  ;;  %v1458_v1 = vpop.permute.xlu0 %1457  ;;  %v3360_v40 = vsel %vm361_vm7, %v1355_v47, %v1357_v6  ;;  %s1996_s25 = scalar_lea.hbm %s3793_s7, %s2296_s22 }
 0x2ee   : > { %v3363_v52 = vsel %vm373_vm4, %v1456_v54, %v1458_v1  ;;  %s2000_s17 = sshll.u32 %s1996_s25, 4  ;;  %s2001_s17 = int_to_ptr.hbm [resolvable:$true] %s2000_s17 }
 0x2ef   : > { %s2450_s9 = sshra.s32 %s2001_s17, 4  ;;  %s2451_s9 = int_to_ptr.hbm [resolvable:$true] %s2450_s9 }
 0x2f0   : > { %s2452_s10 = scalar_lea.hbm %s2451_s9, 24  ;;  %p2457_p3 = scmp.lt.s32.totalorder %s2451_s9, %s3793_s7 }
 0x2f1   : > { %p2453_p0 = scmp.ne.s32.totalorder %s2451_s9, %s2452_s10 }
 0x2f2   : > { %1362 = vrot.lane.b32.xlu1 %v3242_v50, %s2518_s23 }
 0x2f3   : > { %1364 = vrot.lane.b32.xlu2 %v3272_v16, %s2518_s23  ;;  %1754 = vrot.lane.b32.xlu0 %v3045_v60, %s3816_s24  ;;  %p2454_p1 = pnand %p2453_p0, %p2603_p5 }
 0x2f4   : > { %v1460_v63 = vpop.permute.xlu1 %1459 }
 0x2f5   : > { %v3371_v18 = vpop.permute.xlu2 %1566  ;;  %v1561_v21 = vpop.permute.xlu0 %1560  ;;  %v3374_v0 = vsel %vm373_vm4, %v1458_v1, %v1460_v63  ;;  %p2455_p2 = pneg %p2454_p1 }
 0x2f6   : > { %v3377_v47 = vsel %vm385_vm5, %v1559_v38, %v1561_v21 }
 0x2f7   : > { %3818 = vst [vmem:[#allocation21_spill] sm:$0xff] %v3377_v47 }
 0x2fa   : > { %1873 = vrot.lane.b32.xlu1 %v3202_v24, %s3817_s15 }
 0x2fb   : > { %1750 = vrot.lane.b32.xlu2 %v3006_v29, %s3816_s24  ;;  %1746 = vrot.lane.b32.xlu0 %v2968_v11, %s3816_s24 }
 0x2fc   : > { %v1051_v54 = vpop.permute.xlu1 %1050 }
 0x2fd   : > { %v3385_v6 = vpop.permute.xlu2 %1669  ;;  %v1563_v53 = vpop.permute.xlu0 %1562 }
 0x2fe   : > { %v3388_v14 = vsel %vm385_vm5, %v1561_v21, %v1563_v53  ;;  %v1269_v21 = vsel %vm349_vm6, %v1248_v42, %v3294_v31 }
 0x302   : > { %1465 = vrot.lane.b32.xlu1 %v3242_v50, %s2515_s20 }
 0x303   : > { %1467 = vrot.lane.b32.xlu2 %v3272_v16, %s2515_s20  ;;  %1768 = vrot.lane.b32.xlu0 %v3134_v48, %s3816_s24 }
 0x304   : > { %v1256_v1 = vpop.permute.xlu1 %1255 }
 0x305   : > { %v3396_v24 = vpop.permute.xlu2 %1052  ;;  %v1049_v38 = vpop.permute.xlu0 %1048  ;;  %v1272_v63 = vsel %vm349_vm6, %v1256_v1, %v3344_v32 }
 0x306   : > { %v1065_v47 = vsel %vm337_vm8, %v1049_v38, %v1051_v54  ;;  %1294 = vmatpush.bf16.msrb.mxu1 %v1272_v63 }
 0x307   : > { %1088 = vmatpush.bf16.msra.mxu3 %v1065_v47 }
 0x30a   : > { %1748 = vrot.lane.b32.xlu1 %v2966_v10, %s3816_s24  ;;  %1295 = vmatpush.bf16.msrb.mxu1 %v1269_v21  ;;  %v3506_v21 = vld [vmem:[#allocation7 + $0x8] sm:$0xf] }
 0x30b   : > { %1867 = vrot.lane.b32.xlu2 %v3104_v33, %s3817_s15  ;;  %1568 = vrot.lane.b32.xlu0 %v3242_v50, %s2516_s21  ;;  %v1066_v33 = vsel %vm337_vm8, %v1051_v54, %v3396_v24 }
 0x30c   : > { %1089 = vmatpush.bf16.msra.mxu3 %v3300_v27  ;;  %v3410_v53 = vpop.permute.xlu1 %1463 }
 0x30d   : > { %v3412_v1 = vpop.permute.xlu2 %1661  ;;  %v3414_v47 = vpop.permute.xlu0 %1360 }
 0x30e   : > { %v1375_v31 = vsel %vm361_vm7, %v1359_v19, %v3414_v47  ;;  %1296 = vmatpush.bf16.msrb.mxu1 %v3216_v30  ;;  %v3421_v42 = vsel %vm397_vm2, %v1660_v2, %v3412_v1 }
 0x30f   : > { %1397 = vmatpush.bf16.msra.mxu0 %v1375_v31 }
 0x310   : > { %1090 = vmatpush.bf16.msra.mxu3 %v3213_v28  ;;  %v3437_v28 = vld [vmem:[#allocation7 + $0x4] sm:$0xf] }
 0x312   : > { %1865 = vrot.lane.b32.xlu1 %v3112_v39, %s3817_s15  ;;  %1297 = vmatpush.bf16.msrb.mxu1 %v3143_v55 }
 0x313   : > { %1752 = vrot.lane.b32.xlu2 %v3001_v35, %s3816_s24  ;;  %1570 = vrot.lane.b32.xlu0 %v3272_v16, %s2516_s21 }
 0x314   : > { %1091 = vmatpush.bf16.msra.mxu3 %v3129_v45  ;;  %1398 = vmatpush.bf16.msra.mxu0 %v3309_v43  ;;  %v3435_v30 = vpop.permute.xlu1 %1564  ;;  %v1063_v45 = vsel %vm337_vm8, %v3296_v37, %v3342_v9 }
 0x315   : > { %v1652_v39 = vpop.permute.xlu2 %1651  ;;  %v3439_v55 = vpop.permute.xlu0 %1461  ;;  %2238 = vmatmul.msk.bf16.vlgmr.msrb.gmra.mxu1 %vm1080_vm1, %v3506_v21 }
 0x317   : > { %2184 = vmatmul.msk.bf16.vlgmr.msra.gmra.mxu3 %vm1080_vm1, %v3437_v28 }
 0x318   : > { %1101 = vmatpush.bf16.msrb.mxu3 %v1066_v33  ;;  %1399 = vmatpush.bf16.msra.mxu0 %v3225_v34 }
 0x31a   : > { %1671 = vrot.lane.b32.xlu1 %v3242_v50, %s2513_s18 }
 0x31b   : > { %1673 = vrot.lane.b32.xlu2 %v3272_v16, %s2513_s18  ;;  %1760 = vrot.lane.b32.xlu0 %v3084_v23, %s3816_s24  ;;  %s2456_s18 = scalar_lea.hbm %s3793_s7, 48 }
 0x31c   : > { %1102 = vmatpush.bf16.msrb.mxu3 %v1063_v45  ;;  %1400 = vmatpush.bf16.msra.mxu0 %v3146_v56  ;;  %v3454_v19 = vpop.permute.xlu1 %1667  ;;  %p2458_p4 = scmp.lt.s32.totalorder %s2456_s18, %s2452_s10 }
 0x31d   : > { %v3457_v34 = vpop.permute.xlu2 %1645  ;;  %v3459_v27 = vpop.permute.xlu0 %1544 }
 0x31e   : > { %p2459_p7 = por %p2458_p4, %p2457_p3 }
 0x320   : > { %1103 = vmatpush.bf16.msrb.mxu3 %v3234_v44  ;;  %p2460_p8 = pnand %p2459_p7, %p2455_p2 }
 0x322   : > { %1859 = vrot.lane.b32.xlu1 %v3047_v51, %s3817_s15  ;;  %v3481_v51 = vld [vmem:[#allocation7] sm:$0xf] }
 0x323   : > { %1774 = vrot.lane.b32.xlu2 %v3242_v50, %s3816_s24  ;;  %1857 = vrot.lane.b32.xlu0 %v3045_v60, %s3817_s15 }
 0x324   : > { %1104 = vmatpush.bf16.msrb.mxu3 %v3132_v46  ;;  %v3468_v56 = vpop.permute.xlu1 %1554  ;;  %2237 = vmatmul.msk.bf16.vlgmr.msrb.gmra.mxu0 %vm1080_vm1, %v3481_v51 }
 0x325   : > { %v3470_v37 = vpop.permute.xlu2 %1655  ;;  %v1654_v44 = vpop.permute.xlu0 %1653 }
 0x326   : > { %v3473_v43 = vsel %vm397_vm2, %v1652_v39, %v1654_v44  ;;  %v3477_v46 = vsel %vm397_vm2, %v1654_v44, %v3470_v37  ;;  %v2213_v39 = vld [vmem:[#allocation2 + $0x40] sm:$0xf] }
 0x327   : > { %2185 = vmatmul.msk.bf16.vlgmr.msrb.gmra.mxu3 %vm1080_vm1, %v3437_v28  ;;  %v2201_v44 = vld [vmem:[#allocation2 + $0x20] sm:$0xf] }
 0x32a   : > { %1871 = vrot.lane.b32.xlu1 %v3134_v48, %s3817_s15 }
 0x32b   : > { %1849 = vrot.lane.b32.xlu2 %v2968_v11, %s3817_s15  ;;  %1776 = vrot.lane.b32.xlu0 %v3272_v16, %s3816_s24 }
 0x32c   : > { %v1644_v60 = vpop.permute.xlu1 %1643 }
 0x32d   : > { %v3491_v2 = vpop.permute.xlu2 %1762  ;;  %v1055_v9 = vpop.permute.xlu0 %1054  ;;  %v3495_v54 = vsel %vm397_vm2, %v1644_v60, %v3457_v34  ;;  %v2271_v60 = vld [vmem:[#allocation2 + $0x2c] sm:$0xf0] }
 0x32e   : > { %v1067_v48 = vsel %vm337_vm8, %v3396_v24, %v1055_v9 }
 0x32f   : > { %1114 = vmatpush.bf16.msra.mxu3 %v1067_v48  ;;  %v2268_v48 = vld [vmem:[#allocation2 + $0xc] sm:$0xf0] }
 0x332   : > { %1877 = vrot.lane.b32.xlu1 %v3242_v50, %s3817_s15  ;;  %v3514_v50 = vld [vmem:[#allocation7 + $0xc] sm:$0xf] }
 0x333   : > { %1879 = vrot.lane.b32.xlu2 %v3272_v16, %s3817_s15  ;;  %1869 = vrot.lane.b32.xlu0 %v3148_v58, %s3817_s15  ;;  %v2277_v16 = vld [vmem:[#allocation2 + $0x6c] sm:$0xf0]  ;;  %v2225_v58 = vld [vmem:[#allocation2 + $0x60] sm:$0xf] }
 0x334   : > { %1115 = vmatpush.bf16.msra.mxu3 %v3348_v25  ;;  %v1666_v11 = vpop.permute.xlu1 %1665  ;;  %2241 = vmatmul.msk.bf16.vlgmr.msra.gmra.mxu0 %vm1080_vm1, %v3514_v50  ;;  %v2226_v25 = vor.u32 %v2277_v16, %v2225_v58 }
 0x335   : > { %v1650_v38 = vpop.permute.xlu2 %1649  ;;  %v1547_v63 = vpop.permute.xlu0 %1546 }
 0x336   : > { %v3510_v24 = vsel %vm385_vm5, %v3459_v27, %v1547_v63 }
 0x338   : > { %1116 = vmatpush.bf16.msra.mxu3 %v3267_v4  ;;  %v2274_v4 = vld [vmem:[#allocation2 + $0x4c] sm:$0xf0] }
 0x33a   : > { %1861 = vrot.lane.b32.xlu1 %v3076_v15, %s3817_s15 }
 0x33b   : > { %1863 = vrot.lane.b32.xlu2 %v3084_v23, %s3817_s15  ;;  %1851 = vrot.lane.b32.xlu0 %v2966_v10, %s3817_s15  ;;  %v2214_v10 = vor.u32 %v2274_v4, %v2213_v39  ;;  %v2276_v4 = vld [vmem:[#allocation2 + $0x64] sm:$0xf]  ;;  %v2215_v39 = vld [vmem:[#allocation2 + $0x50] sm:$0xf0] }
 0x33c   : > { %1117 = vmatpush.bf16.msra.mxu3 %v3171_v8  ;;  %v3526_v31 = vpop.permute.xlu1 %1772  ;;  %v1950_v8 = vld [vmem:[%s3792_s6] sm:$0xff] }
 0x33d   : > { %v3528_v33 = vpop.permute.xlu2 %1758  ;;  %v1664_v15 = vpop.permute.xlu0 %1663 }
 0x33e   : > { %v3532_v45 = vsel %vm397_vm2, %v3412_v1, %v1664_v15  ;;  %v3535_v23 = vsel %vm397_vm2, %v1664_v15, %v1666_v11  ;;  %v2202_v1 = vor.u32 %v2271_v60, %v2201_v44  ;;  %v2227_v11 = vld [vmem:[#allocation2 + $0x70] sm:$0xf0] }
 0x33f   : > { %2186 = vmatmul.msk.bf16.vlgmr.msra.gmra.mxu3 %vm1080_vm1, %v3437_v28  ;;  %v2230_v15 = vor.u32 %v2276_v4, %v2227_v11  ;;  %v2267_v4 = vld [vmem:[#allocation2 + $0x4] sm:$0xf] }
 0x340   : > { %1194 = vmatpush.bf16.msrb.mxu3 %v2226_v25 }
 0x342   : > { %1855 = vrot.lane.b32.xlu1 %v3001_v35, %s3817_s15 }
 0x343   : > { %1953 = vperm.xlu2 %2369, %v1950_v8   ;;  %1853 = vrot.lane.b32.xlu0 %v3006_v29, %s3817_s15  ;;  %v2189_v29 = vld [vmem:[#allocation2] sm:$0xf] }
 0x344   : > { %1195 = vmatpush.bf16.msrb.mxu3 %v2214_v10  ;;  %v1648_v9 = vpop.permute.xlu1 %1647  ;;  %v2190_v25 = vor.u32 %v2268_v48, %v2189_v29  ;;  %v2372_v10 = vld [vmem:[%s2643_s16 + $0x8] sm:$0xff]  ;;  %v2373_v8 = vld [vmem:[%s2643_s16] sm:$0xff] }
 0x345   : > { %v1771_v28 = vpop.permute.xlu0 %1770  ;;  %v3548_v63 = vsel %vm397_vm2, %v3457_v34, %v1648_v9  ;;  %v3551_v35 = vsel %vm397_vm2, %v1648_v9, %v1650_v38  ;;  %v3557_v58 = vpop.permute.xlu2 %1875  ;;  %v2273_v34 = vld [vmem:[#allocation2 + $0x44] sm:$0xf]  ;;  %v2374_v38 = vld [vmem:[%s2643_s16 + $0x10] sm:$0xff] }
 0x346   : > { %v3555_v16 = vsel %vm409_vm3, %v1771_v28, %v3526_v31  ;;  %v2218_v60 = vor.u32 %v2273_v34, %v2215_v39  ;;  %v2270_v9 = vld [vmem:[#allocation2 + $0x24] sm:$0xf]  ;;  %v2203_v28 = vld [vmem:[#allocation2 + $0x30] sm:$0xf0] }
 0x347   : > { %v2206_v11 = vor.u32 %v2270_v9, %v2203_v28 }
 0x348   : > { %1196 = vmatpush.bf16.msrb.mxu3 %v2202_v1 }
 0x34a   : > { %1965 = vrot.lane.b32.xlu1 %v2372_v10, %s2515_s20 }
 0x34b   : > { %1963 = vrot.lane.b32.xlu0 %v2373_v8, %s2515_s20  ;;  %1967 = vrot.lane.b32.xlu2 %v2374_v38, %s2515_s20 }
 0x34c   : > { %1197 = vmatpush.bf16.msrb.mxu3 %v2190_v25  ;;  %v3565_v44 = vpop.permute.xlu1 %1766  ;;  %v2191_v25 = vld [vmem:[#allocation2 + $0x10] sm:$0xf0] }
 0x34d   : > { %v1658_v1 = vpop.permute.xlu0 %1657  ;;  %v1365_v29 = vpop.permute.xlu2 %1364  ;;  %v2194_v10 = vor.u32 %v2267_v4, %v2191_v25 }
 0x34e   : > { %v3569_v48 = vsel %vm397_vm2, %v3470_v37, %v1658_v1 }
 0x34f   : > { %2235 = vmatmul.msk.bf16.vlgmr.msrb.gmra.mxu3 %vm1080_vm1, %v3481_v51 }
 0x350   : > { %1207 = vmatpush.bf16.msra.mxu3 %v2230_v15  ;;  %v2375_v15 = vld [vmem:[%s2643_s16 + $0x18] sm:$0xff]  ;;  %s304_s16 = sand.u32 1, %s2498_s27  }
 0x351   : > { %s1985_s19 = scalar_lea.sflag [#allocation6], %s304_s16 }
 0x353   : > { %1969 = vrot.lane.b32.xlu0 %v2375_v15, %s2515_s20  ;;  %s2295_s20 = smul.u32 24, %s304_s16 }
 0x354   : > { %1208 = vmatpush.bf16.msra.mxu3 %v2218_v60  ;;  %v3575_v39 = vpop.permute.xlu1 %1756 }
 0x355   : > { %v3577_v34 = vpop.permute.xlu0 %1764  ;;  %v3584_v8 = vpop.permute.xlu2 %1750  ;;  %s306_s4 = scalar_lea.vmem [#allocation9], %s2295_s20 }
 0x356   : > { %v3582_v37 = vsel %vm409_vm3, %v3491_v2, %v3577_v34  ;;  %s1998_s30 = sshll.u32 %s306_s4, 4  ;;  %s1999_s30 = int_to_ptr.vmem [resolvable:$true] %s1998_s30 }
 0x358   : > { %1209 = vmatpush.bf16.msra.mxu3 %v2206_v11 }
 0x35c   : > { %1210 = vmatpush.bf16.msra.mxu3 %v2194_v10  ;;  %v1262_v38 = vpop.permute.xlu1 %1261  ;;  %v1539_v10 = vld [vmem:[#allocation7 + $0x14] sm:$0xf] }
 0x35d   : > { %v1260_v60 = vpop.permute.xlu0 %1259  ;;  %v1468_v28 = vpop.permute.xlu2 %1467 }
 0x35e   : > { %v1274_v1 = vsel %vm349_vm6, %v1260_v60, %v1262_v38  ;;  %v1273_v9 = vsel %vm349_vm6, %v3344_v32, %v1260_v60 }
 0x35f   : > { %2236 = vmatmul.msk.bf16.vlgmr.msra.gmra.mxu3 %vm1080_vm1, %v3481_v51  ;;  %1307 = vmatpush.bf16.msrb.mxu2 %v1273_v9 }
 0x360   : > { %1320 = vmatpush.bf16.msrb.mxu3 %v1274_v1 }
 0x363   : > { %1308 = vmatpush.bf16.msrb.mxu2 %v3331_v7  ;;  %v1478_v7 = vsel %vm373_vm4, %v3439_v55, %v3410_v53  ;;  %v3825_v55 = vld [vmem:[#allocation15_spill] sm:$0xff] }
 0x364   : > { %1321 = vmatpush.bf16.msrb.mxu3 %v3334_v17  ;;  %v1363_v2 = vpop.permute.xlu1 %1362 }
 0x365   : > { %v1376_v11 = vsel %vm361_vm7, %v3414_v47, %v1363_v2  ;;  %v3595_v25 = vpop.permute.xlu0 %1754  ;;  %v1377_v32 = vsel %vm361_vm7, %v1363_v2, %v1365_v29  ;;  %v3827_v29 = vld [vmem:[#allocation17_spill] sm:$0xff] }
 0x366   : > { %1410 = vmatpush.bf16.msra.mxu1 %v1376_v11  ;;  %v1745_v11 = vld [vmem:[#allocation7 + $0x1c] sm:$0xf] }
 0x367   : > { %1309 = vmatpush.bf16.msrb.mxu2 %v3283_v22  ;;  %v3613_v22 = vpop.permute.xlu2 %1867 }
 0x368   : > { %1322 = vmatpush.bf16.msrb.mxu3 %v3286_v26 }
 0x36a   : > { %1411 = vmatpush.bf16.msra.mxu1 %v3351_v3 }
 0x36b   : > { %1310 = vmatpush.bf16.msrb.mxu2 %v3180_v12 }
 0x36c   : > { %1323 = vmatpush.bf16.msrb.mxu3 %v3183_v13  ;;  %v3606_v17 = vpop.permute.xlu1 %1873 }
 0x36d   : > { %v3608_v47 = vpop.permute.xlu0 %1746 }
 0x36e   : > { %2239 = vmatmul.msk.bf16.vlgmr.msrb.gmra.mxu2 %vm1080_vm1, %v3506_v21  ;;  %1412 = vmatpush.bf16.msra.mxu1 %v3240_v49 }
 0x36f   : > { %1423 = vmatpush.bf16.msra.mxu2 %v1377_v32  ;;  %2240 = vmatmul.msk.bf16.vlgmr.msrb.gmra.mxu3 %vm1080_vm1, %v3506_v21 }
 0x370   : > { %1500 = vmatpush.bf16.msra.mxu3 %v1478_v7 }
 0x372   : > { %1413 = vmatpush.bf16.msra.mxu1 %v3194_v5  ;;  %v3633_v5 = vpop.permute.xlu2 %1752 }
 0x373   : > { %1424 = vmatpush.bf16.msra.mxu2 %v3360_v40  ;;  %v1581_v40 = vsel %vm385_vm5, %v3435_v30, %v3371_v18  ;;  %v3824_v30 = vld [vmem:[#allocation13_spill] sm:$0xff] }
 0x374   : > { %1501 = vmatpush.bf16.msra.mxu3 %v3321_v36  ;;  %v1466_v12 = vpop.permute.xlu1 %1465  ;;  %v1572_v51 = vsel %vm385_vm5, %v3825_v55, %v3824_v30  ;;  %v1573_v15 = vsel %vm385_vm5, %v3824_v30, %v3459_v27 }
 0x375   : > { %v1479_v13 = vsel %vm373_vm4, %v3410_v53, %v1466_v12  ;;  %v1480_v49 = vsel %vm373_vm4, %v1466_v12, %v1468_v28  ;;  %v3625_v26 = vpop.permute.xlu0 %1768  ;;  %2242 = vmatmul.msk.bf16.vlgmr.msra.gmra.mxu1 %vm1080_vm1, %v3514_v50  ;;  %v3823_v53 = vld [vmem:[#allocation21_spill] sm:$0xff] }
 0x376   : > { %1513 = vmatpush.bf16.msrb.mxu0 %v1479_v13  ;;  %1526 = vmatpush.bf16.msrb.mxu1 %v1480_v49  ;;  %v1786_v28 = vsel %vm409_vm3, %v3565_v44, %v3625_v26  ;;  %v1780_v26 = vsel %vm409_vm3, %v3584_v8, %v3633_v5 }
 0x377   : > { %1425 = vmatpush.bf16.msra.mxu2 %v3255_v59  ;;  %v1436_v59 = vld [vmem:[#allocation7 + $0x10] sm:$0xf] }
 0x378   : > { %1502 = vmatpush.bf16.msra.mxu3 %v3237_v41 }
 0x37a   : > { %1514 = vmatpush.bf16.msrb.mxu0 %v3363_v52  ;;  %1527 = vmatpush.bf16.msrb.mxu1 %v3374_v0  ;;  %v3820_v0 = vld [vmem:[#allocation18_spill] sm:$0xff]  ;;  %v1674_v52 = vpop.permute.xlu2 %1673 }
 0x37b   : > { %1426 = vmatpush.bf16.msra.mxu2 %v3197_v20  ;;  %v3821_v20 = vld [vmem:[#allocation14_spill] sm:$0xff] }
 0x37c   : > { %1503 = vmatpush.bf16.msra.mxu3 %v3157_v62  ;;  %v3638_v41 = vpop.permute.xlu1 %1748  ;;  %v3819_v62 = vld [vmem:[#allocation19_spill] sm:$0xff] }
 0x37d   : > { %v1569_v36 = vpop.permute.xlu0 %1568 }
 0x37e   : > { %v1582_v3 = vsel %vm385_vm5, %v3371_v18, %v1569_v36  ;;  %2243 = vmatmul.msk.bf16.vlgmr.msra.gmra.mxu2 %vm1080_vm1, %v3514_v50  ;;  %1515 = vmatpush.bf16.msrb.mxu0 %v3258_v61  ;;  %v3822_v18 = vld [vmem:[#allocation16_spill] sm:$0xff] }
 0x37f   : > { %1603 = vmatpush.bf16.msrb.mxu2 %v1581_v40  ;;  %2244 = vmatmul.msk.bf16.vlgmr.msra.gmra.mxu3 %vm1080_vm1, %v1436_v59 }
 0x380   : > { %1528 = vmatpush.bf16.msrb.mxu1 %v3819_v62  ;;  %1616 = vmatpush.bf16.msrb.mxu3 %v1582_v3 }
 0x382   : > { %1516 = vmatpush.bf16.msrb.mxu0 %v3821_v20  ;;  %v1775_v60 = vpop.permute.xlu2 %1774 }
 0x383   : > { %1604 = vmatpush.bf16.msrb.mxu2 %v3318_v57  ;;  %v1684_v57 = vsel %vm397_vm2, %v3454_v19, %v3385_v6  ;;  %v3826_v19 = vld [vmem:[#allocation20_spill] sm:$0xff] }
 0x384   : > { %1529 = vmatpush.bf16.msrb.mxu1 %v3822_v18  ;;  %1617 = vmatpush.bf16.msrb.mxu3 %v3823_v53  ;;  %v3655_v61 = vpop.permute.xlu1 %1865  ;;  %v1576_v4 = vsel %vm385_vm5, %v3827_v29, %v3826_v19 }
 0x385   : > { %v1571_v21 = vpop.permute.xlu0 %1570  ;;  %2245 = vmatmul.msk.bf16.vlgmr.msrb.gmra.mxu0 %vm1080_vm1, %v1436_v59 }
 0x386   : > { %v1583_v50 = vsel %vm385_vm5, %v1569_v36, %v1571_v21 }
 0x387   : > { %1605 = vmatpush.bf16.msrb.mxu2 %v3820_v0  ;;  %2246 = vmatmul.msk.bf16.vlgmr.msrb.gmra.mxu1 %vm1080_vm1, %v1436_v59 }
 0x388   : > { %1706 = vmatpush.bf16.msra.mxu1 %v1684_v57  ;;  %1629 = vmatpush.bf16.msra.mxu0 %v1583_v50 }
 0x389   : > { %1618 = vmatpush.bf16.msrb.mxu3 %v1576_v4 }
 0x38b   : > { %1606 = vmatpush.bf16.msrb.mxu2 %v1572_v51 }
 0x38c   : > { %1707 = vmatpush.bf16.msra.mxu1 %v3421_v42  ;;  %1630 = vmatpush.bf16.msra.mxu0 %v3388_v14  ;;  %v1672_v38 = vpop.permute.xlu1 %1671  ;;  %v1577_v42 = vsel %vm385_vm5, %v3826_v19, %v3468_v56  ;;  %v1788_v14 = vsel %vm409_vm3, %v3526_v31, %v1775_v60  ;;  %v1785_v56 = vsel %vm409_vm3, %v3577_v34, %v3565_v44 }
 0x38d   : > { %1619 = vmatpush.bf16.msrb.mxu3 %v1573_v15  ;;  %v1685_v1 = vsel %vm397_vm2, %v3385_v6, %v1672_v38  ;;  %v1686_v9 = vsel %vm397_vm2, %v1672_v38, %v1674_v52  ;;  %v1761_v2 = vpop.permute.xlu0 %1760  ;;  %v1642_v6 = vld [vmem:[#allocation7 + $0x18] sm:$0xf] }
 0x38e   : > { %2247 = vmatmul.msk.bf16.vlgmr.msrb.gmra.mxu2 %vm1080_vm1, %v1539_v10  ;;  %v1783_v12 = vsel %vm409_vm3, %v3528_v33, %v1761_v2 }
 0x38f   : > { %1719 = vmatpush.bf16.msra.mxu2 %v1685_v1 }
 0x390   : > { %1708 = vmatpush.bf16.msra.mxu1 %v3473_v43  ;;  %2248 = vmatmul.msk.bf16.vlgmr.msrb.gmra.mxu3 %vm1080_vm1, %v1539_v10 }
 0x391   : > { %1732 = vmatpush.bf16.msra.mxu3 %v1686_v9  ;;  %1631 = vmatpush.bf16.msra.mxu0 %v1577_v42 }
 0x392   : > { %v1299_v0 = vpop.f32.mrf.mxu1 }
 0x393   : > { %1720 = vmatpush.bf16.msra.mxu2 %v3532_v45  ;;  %v1781_v45 = vsel %vm409_vm3, %v3595_v25, %v3575_v39 }
 0x394   : > { %1709 = vmatpush.bf16.msra.mxu1 %v3495_v54  ;;  %v1860_v27 = vpop.permute.xlu1 %1859  ;;  %v1850_v54 = vpop.permute.xlu2 %1849 }
 0x395   : > { %1733 = vmatpush.bf16.msra.mxu3 %v3535_v23  ;;  %1632 = vmatpush.bf16.msra.mxu0 %v3510_v24  ;;  %v1858_v43 = vpop.permute.xlu0 %1857  ;;  %v1782_v24 = vsel %vm409_vm3, %v3575_v39, %v3528_v33  ;;  %v1890_v23 = vsel %vm421_vm0, %v3606_v17, %v3557_v58  ;;  %v1778_v39 = vsel %vm409_vm3, %v3608_v47, %v3638_v41 }
 0x396   : > { %v1884_v25 = vsel %vm421_vm0, %v1858_v43, %v1860_v27 }
 0x397   : > { %2250 = vmatmul.msk.bf16.vlgmr.msra.gmra.mxu1 %vm1080_vm1, %v1642_v6  ;;  %1721 = vmatpush.bf16.msra.mxu2 %v3477_v46 }
 0x398   : > { %1822 = vmatpush.bf16.msrb.mxu1 %v1788_v14  ;;  %2249 = vmatmul.msk.bf16.vlgmr.msra.gmra.mxu0 %vm1080_vm1, %v1539_v10 }
 0x399   : > { %1809 = vmatpush.bf16.msrb.mxu0 %v3555_v16  ;;  %1734 = vmatpush.bf16.msra.mxu3 %v3569_v48  ;;  %v1779_v16 = vsel %vm409_vm3, %v3638_v41, %v3584_v8 }
 0x39a   : > { %v3698_v31 = vpop.f32.mrf.mxu3  ;;  %v1301_v53 = vpop.f32.mrf.mxu1 }
 0x39b   : > { %1722 = vmatpush.bf16.msra.mxu2 %v3548_v63  ;;  %v1887_v63 = vsel %vm421_vm0, %v3655_v61, %v3613_v22 }
 0x39c   : > { %1823 = vmatpush.bf16.msrb.mxu1 %v1785_v56  ;;  %v1872_v46 = vpop.permute.xlu1 %1871  ;;  %v1880_v34 = vpop.permute.xlu2 %1879 }
 0x39d   : > { %1810 = vmatpush.bf16.msrb.mxu0 %v3582_v37  ;;  %1735 = vmatpush.bf16.msra.mxu3 %v3551_v35  ;;  %v1777_v48 = vpop.permute.xlu0 %1776 }
 0x39e   : > { %v1789_v35 = vsel %vm409_vm3, %v1775_v60, %v1777_v48  ;;  %2251 = vmatmul.msk.bf16.vlgmr.msra.gmra.mxu2 %vm1080_vm1, %v1642_v6 }
 0x39f   : > { %1835 = vmatpush.bf16.msrb.mxu2 %v1789_v35 }
 0x3a0   : > { %1824 = vmatpush.bf16.msrb.mxu1 %v1782_v24  ;;  %2252 = vmatmul.msk.bf16.vlgmr.msra.gmra.mxu3 %vm1080_vm1, %v1642_v6 }
 0x3a1   : > { %1811 = vmatpush.bf16.msrb.mxu0 %v1781_v45  ;;  %1912 = vmatpush.bf16.msrb.mxu3 %v1890_v23  ;;  %v1225_v44 = vpop.f32.mrf.mxu0 }
 0x3a2   : > { %v1095_v37 = vpop.f32.mrf.mxu3 }
 0x3a3   : > { %1836 = vmatpush.bf16.msrb.mxu2 %v1786_v28 }
 0x3a4   : > { %1825 = vmatpush.bf16.msrb.mxu1 %v1779_v16  ;;  %v1878_v32 = vpop.permute.xlu1 %1877  ;;  %v1864_v40 = vpop.permute.xlu2 %1863 }
 0x3a5   : > { %1812 = vmatpush.bf16.msrb.mxu0 %v1778_v39  ;;  %1913 = vmatpush.bf16.msrb.mxu3 %v1887_v63  ;;  %v1891_v7 = vsel %vm421_vm0, %v3557_v58, %v1878_v32  ;;  %v1892_v17 = vsel %vm421_vm0, %v1878_v32, %v1880_v34  ;;  %v1870_v47 = vpop.permute.xlu0 %1869 }
 0x3a6   : > { %v1888_v13 = vsel %vm421_vm0, %v3613_v22, %v1870_v47  ;;  %v1889_v49 = vsel %vm421_vm0, %v1870_v47, %v1872_v46  ;;  %v1848_v22 = vld [vmem:[#allocation7 + $0x20] sm:$0xf] }
 0x3a7   : > { %2254 = vmatmul.msk.bf16.vlgmr.msrb.gmra.mxu1 %vm1080_vm1, %v1745_v11  ;;  %1837 = vmatpush.bf16.msrb.mxu2 %v1783_v12 }
 0x3a8   : > { %2253 = vmatmul.msk.bf16.vlgmr.msrb.gmra.mxu0 %vm1080_vm1, %v1745_v11  ;;  %1938 = vmatpush.bf16.msra.mxu1 %v1892_v17 }
 0x3a9   : > { %1914 = vmatpush.bf16.msrb.mxu3 %v1884_v25  ;;  %1925 = vmatpush.bf16.msra.mxu0 %v1891_v7  ;;  %v1227_v62 = vpop.f32.mrf.mxu0 }
 0x3aa   : > { %v1106_v58 = vpop.f32.mrf.mxu3 }
 0x3ab   : > { %1838 = vmatpush.bf16.msrb.mxu2 %v1780_v26 }
 0x3ac   : > { %1939 = vmatpush.bf16.msra.mxu1 %v1889_v49  ;;  %v1862_v41 = vpop.permute.xlu1 %1861 }
 0x3ad   : > { %1926 = vmatpush.bf16.msra.mxu0 %v1888_v13  ;;  %v1852_v33 = vpop.permute.xlu0 %1851  ;;  %v1885_v59 = vsel %vm421_vm0, %v1860_v27, %v1862_v41  ;;  %v1886_v36 = vsel %vm421_vm0, %v1862_v41, %v1864_v40  ;;  %v1954_v40 = vpop.permute.xlu2 %1953 }
 0x3ae   : > { %v1881_v3 = vsel %vm421_vm0, %v1850_v54, %v1852_v33  ;;  %2255 = vmatmul.msk.bf16.vlgmr.msrb.gmra.mxu2 %vm1080_vm1, %v1745_v11 }
 0x3af   : > { %1915 = vmatpush.bf16.msrb.mxu3 %v1881_v3 }
 0x3b0   : > { %1940 = vmatpush.bf16.msra.mxu1 %v1886_v36 }
 0x3b1   : > { %1927 = vmatpush.bf16.msra.mxu0 %v1885_v59  ;;  %v1402_v18 = vpop.f32.mrf.mxu0 }
 0x3b2   : > { %2256 = vmatmul.msk.bf16.vlgmr.msrb.gmra.mxu3 %vm1080_vm1, %v1848_v22  ;;  %v1108_v8 = vpop.f32.mrf.mxu3 }
 0x3b4   : > { %v1856_v5 = vpop.permute.xlu1 %1855 }
 0x3b5   : > { %v1854_v20 = vpop.permute.xlu0 %1853 }
 0x3b6   : > { %v1882_v57 = vsel %vm421_vm0, %v1852_v33, %v1854_v20  ;;  %v1883_v52 = vsel %vm421_vm0, %v1854_v20, %v1856_v5 }
 0x3b7   : > { %1928 = vmatpush.bf16.msra.mxu0 %v1882_v57  ;;  %1941 = vmatpush.bf16.msra.mxu1 %v1883_v52 }
 0x3b9   : > { %v1404_v61 = vpop.f32.mrf.mxu0 }
 0x3ba   : > { %2257 = vmatmul.msk.bf16.vlgmr.msra.gmra.mxu0 %vm1080_vm1, %v1848_v22  ;;  %2258 = vmatmul.msk.bf16.vlgmr.msra.gmra.mxu1 %vm1080_vm1, %v1848_v22  ;;  %v1968_v61 = vpop.permute.xlu2 %1967 }
 0x3bc   : > { %v1966_v57 = vpop.permute.xlu1 %1965 }
 0x3bd   : > { %v1964_v26 = vpop.permute.xlu0 %1963 }
 0x3c2   : > { %v1119_v30 = vpop.f32.mrf.mxu3 }
 0x3c3   : > { %v1226_v55 = vadd.f32 %v1225_v44, %v1119_v30 }
 0x3c5   : > { %v1970_v30 = vpop.permute.xlu0 %1969 }
 0x3ca   : > { %v1121_v51 = vpop.f32.mrf.mxu3 }
 0x3d2   : > { %v1199_v21 = vpop.f32.mrf.mxu3 }
 0x3d3   : > { %v1200_v50 = vadd.f32 %v1199_v21, %v3698_v31 }
 0x3d5   : > { %v1329_v19 = vadd.f32 %v1299_v0, %v1200_v50 }
 0x3d7   : > { %v1432_v29 = vadd.f32 %v1402_v18, %v1329_v19 }
 0x3da   : > { %v1201_v4 = vpop.f32.mrf.mxu3 }
 0x3db   : > { %v1973_v4 = vsel %vm373_vm4, %v1966_v57, %v1968_v61 }
 0x3e2   : > { %v1212_v15 = vpop.f32.mrf.mxu3 }
 0x3e3   : > { %v1213_v10 = vadd.f32 %v1212_v15, %v1106_v58  ;;  %v1974_v15 = vsel %vm373_vm4, %v1968_v61, %v1970_v30 }
 0x3ea   : > { %v1214_v38 = vpop.f32.mrf.mxu3 }
 0x3f1   : > { %v1312_v60 = vpop.f32.mrf.mxu2 }
 0x3f2   : > { %v1325_v1 = vpop.f32.mrf.mxu3  ;;  %v1415_v9 = vpop.f32.mrf.mxu1  ;;  %v1330_v32 = vadd.f32 %v1312_v60, %v1213_v10 }
 0x3f3   : > { %v1331_v7 = vadd.f32 %v1325_v1, %v1226_v55 }
 0x3f4   : > { %v1433_v13 = vadd.f32 %v1415_v9, %v1330_v32 }
 0x3f9   : > { %v1314_v2 = vpop.f32.mrf.mxu2 }
 0x3fa   : > { %v1327_v42 = vpop.f32.mrf.mxu3  ;;  %v1417_v14 = vpop.f32.mrf.mxu1 }
 0x401   : > { %v1428_v6 = vpop.f32.mrf.mxu2 }
 0x402   : > { %v1505_v27 = vpop.f32.mrf.mxu3  ;;  %v1518_v56 = vpop.f32.mrf.mxu0  ;;  %v1434_v49 = vadd.f32 %v1428_v6, %v1331_v7 }
 0x403   : > { %v1535_v58 = vadd.f32 %v1505_v27, %v1432_v29  ;;  %v1536_v41 = vadd.f32 %v1518_v56, %v1433_v13  ;;  %v1972_v29 = vsel %vm373_vm4, %v1964_v26, %v1966_v57 }
 0x404   : > { %v1531_v43 = vpop.f32.mrf.mxu1 }
 0x405   : > { %v1537_v59 = vadd.f32 %v1531_v43, %v1434_v49 }
 0x409   : > { %v1430_v54 = vpop.f32.mrf.mxu2 }
 0x40a   : > { %v1507_v24 = vpop.f32.mrf.mxu3  ;;  %v1520_v45 = vpop.f32.mrf.mxu0 }
 0x40c   : > { %v1533_v31 = vpop.f32.mrf.mxu1 }
 0x411   : > { %v1608_v23 = vpop.f32.mrf.mxu2 }
 0x412   : > { %v1638_v33 = vadd.f32 %v1608_v23, %v1535_v58 }
 0x413   : > { %v1621_v46 = vpop.f32.mrf.mxu3 }
 0x414   : > { %v1711_v48 = vpop.f32.mrf.mxu1  ;;  %v1639_v36 = vadd.f32 %v1621_v46, %v1536_v41 }
 0x415   : > { %v1634_v16 = vpop.f32.mrf.mxu0  ;;  %v1741_v22 = vadd.f32 %v1711_v48, %v1638_v33 }
 0x416   : > { %v1640_v3 = vadd.f32 %v1634_v16, %v1537_v59 }
 0x419   : > { %v1610_v35 = vpop.f32.mrf.mxu2 }
 0x41b   : > { %v1623_v39 = vpop.f32.mrf.mxu3 }
 0x41c   : > { %v1713_v34 = vpop.f32.mrf.mxu1 }
 0x41d   : > { %v1636_v63 = vpop.f32.mrf.mxu0 }
 0x421   : > { %v1724_v37 = vpop.f32.mrf.mxu2 }
 0x422   : > { %v1742_v62 = vadd.f32 %v1724_v37, %v1639_v36 }
 0x423   : > { %v1737_v28 = vpop.f32.mrf.mxu3 }
 0x424   : > { %v1827_v25 = vpop.f32.mrf.mxu1  ;;  %v1743_v5 = vadd.f32 %v1737_v28, %v1640_v3 }
 0x425   : > { %v1814_v11 = vpop.f32.mrf.mxu0  ;;  %v1845_v52 = vadd.f32 %v1827_v25, %v1742_v62 }
 0x426   : > { %v1844_v0 = vadd.f32 %v1814_v11, %v1741_v22 }
 0x429   : > { %v1726_v17 = vpop.f32.mrf.mxu2 }
 0x42b   : > { %v1739_v47 = vpop.f32.mrf.mxu3 }
 0x42c   : > { %v1829_v44 = vpop.f32.mrf.mxu1 }
 0x42d   : > { %v1816_v12 = vpop.f32.mrf.mxu0 }
 0x431   : > { %v1840_v8 = vpop.f32.mrf.mxu2 }
 0x432   : > { %v1846_v18 = vadd.f32 %v1840_v8, %v1743_v5 }
 0x435   : > { %v1917_v20 = vpop.f32.mrf.mxu3 }
 0x436   : > { %v1947_v53 = vadd.f32 %v1917_v20, %v1844_v0 }
 0x437   : > { %v1930_v55 = vpop.f32.mrf.mxu0  ;;  %v1943_v51 = vpop.f32.mrf.mxu1 }
 0x438   : > { %v1956_v21 = vadd.f32 %v1954_v40, %v1947_v53  ;;  %v1948_v50 = vadd.f32 %v1930_v55, %v1845_v52  ;;  %v1949_v19 = vadd.f32 %v1943_v51, %v1846_v18 }
 0x439   : > { %v1842_v1 = vpop.f32.mrf.mxu2 }
 0x43a   : > { %v1957_v10 = vadd.f32 %v1954_v40, %v1948_v50  ;;  %v1958_v38 = vadd.f32 %v1954_v40, %v1949_v19  ;;  %v1978_v60 = vadd.f32 %v1972_v29, %v1956_v21 }
 0x43c   : > { %1981 = vst [vmem:[%s306_s4] sm:$0xff] %v1978_v60  ;;  %v1979_v9 = vadd.f32 %v1973_v4, %v1957_v10  ;;  %v1980_v2 = vadd.f32 %v1974_v15, %v1958_v38 }
 0x43d   : > { %v1919_v42 = vpop.f32.mrf.mxu3 }
 0x43e   : > { %1982 = vst [vmem:[%s306_s4 + $0x8] sm:$0xff] %v1979_v9 }
 0x43f   : > { %1983 = vst [vmem:[%s306_s4 + $0x10] sm:$0xff] %v1980_v2  ;;  %v1932_v14 = vpop.f32.mrf.mxu0  ;;  %v1945_v6 = vpop.f32.mrf.mxu1 }
 0x440   : > { %2463 = shalt.err (!%p2460_p8)
}
 0x441   : > { %2305 = dma.vmem_to_hbm [thread:$0]  (%p2603_p5), %s1999_s30, 384, %s2001_s17, %s1985_s19  }
 0x442 PF: > { %p2322_p9 = scmp.ge.s32.totalorder %s2506_s29, 2  ;;  %s2012_s16 = sand.u32 1, %s2494_s26  }
 0x443   : > { %s2013_s22 = scalar_lea.sflag [#allocation6], %s2012_s16 }
 0x444   : > { %p2315_p10 = pnand %p2322_p9, %p2607_p6 }
 0x446   : > { %p2316_p11 = pneg %p2315_p10 }
 0x448   : > { %2489 = dma.done.wait (%p2316_p11), %s2013_s22, 384  }
 0x449   : > { %2491 = vsyncadd (%p2316_p11), %s2013_s22, 4294966912  ;;  %p20_p12 = scmp.ge.s32.totalorder %s2590_s8, 4   ;;  %s3828_s26 = smov %s2498_s27 }
 0x44a   : > { %s3829_s27 = smov %s2502_s28  ;;  %s3830_s28 = smov %s2601_s11 }
 0x44b   : > { %s3831_s29 = smov %s2590_s8  ;;  %22 = sbr.rel (!%p20_p12) target bundleno = 7 (0x7), region = 100 }
 0x450   :  { %2019 = vsyncpa [#allocation5], 1 }
 0x451   :  { %2021 = vsyncpa [#allocation5 + $0x1], 1 }
 0x452   :  { %2022 = vsyncpa [#allocation8], 1 }
 0x453   :  { %2023 = vsyncpa [#allocation6], 1 }
 0x454   :  { %2025 = vsyncpa [#allocation6 + $0x1], 1 }

</bundles_post_ra>
